<compile_context>
chip_gen: v7x
topology: tpu7x:2x2x1
jax: 0.10.0
libtpu: 0.0.40
codegen_flags: <defaults>
</compile_context>

<pallas_src>
import jax
import jax.numpy as jnp
from jax import lax
from jax.experimental import pallas as pl
from jax.experimental.pallas import tpu as pltpu


def basic_block_kernel(x_ref, w1_ref, b1_ref, w2_ref, b2_ref, out_ref, pad_scr):
    # x_ref:    (1, H, W, C)   f32 input (also the identity shortcut)
    # w1_ref:   (9, C, C)      bf16 conv1 weights (BN1 scale pre-folded), (kh*3+kw, cin, cout)
    # b1_ref:   (1, C)         f32 folded bn1 bias
    # w2_ref:   (9, C, C)      bf16 conv2 weights (BN2 scale pre-folded)
    # b2_ref:   (1, C)         f32 folded bn2 bias
    # out_ref:  (1, H, W, C)   f32
    # pad_scr:  (H+2, W+2, C)  f32 VMEM scratch, reused for conv1 and conv2 inputs
    H = out_ref.shape[1]
    W = out_ref.shape[2]
    C = out_ref.shape[3]

    # ---- zero only the 1-wide halo (interior is fully overwritten below) ----
    zrow = jnp.zeros((1, W + 2, C), jnp.float32)
    zcol = jnp.zeros((H + 2, 1, C), jnp.float32)
    pad_scr[0:1, :, :] = zrow
    pad_scr[H + 1:H + 2, :, :] = zrow
    pad_scr[:, 0:1, :] = zcol
    pad_scr[:, W + 1:W + 2, :] = zcol

    # ---- stage the single VMEM copy of x into the padded scratch ----
    x = x_ref[0]                                    # (H, W, C) f32
    pad_scr[1:H + 1, 1:W + 1, :] = x

    def conv3x3(w_ref):
        # 3x3 conv as 9 shifted matmuls on the MXU, bf16 operands, f32 accumulate.
        # Single chained accumulator so partial sums can stay in the MXU result
        # buffer (in-place accumulate on v7x).
        acc = jnp.zeros((H * W, C), jnp.float32)
        for kh in range(3):
            for kw in range(3):
                win = pad_scr[kh:kh + H, kw:kw + W, :].reshape(H * W, C)
                acc = acc + jnp.dot(win.astype(jnp.bfloat16),
                                    w_ref[kh * 3 + kw],
                                    preferred_element_type=jnp.float32)
        return acc

    # ---- conv1 (BN1 scale folded into weights) -> + bias -> relu ----
    y1 = jnp.maximum(conv3x3(w1_ref) + b1_ref[0], 0.0)

    # refill the scratch interior with relu1 for conv2 (halo is still zero)
    pad_scr[1:H + 1, 1:W + 1, :] = y1.reshape(H, W, C)

    # ---- conv2 (BN2 scale folded) -> + bias -> + identity shortcut (step='add') ----
    y2 = conv3x3(w2_ref) + b2_ref[0] + x.reshape(H * W, C)
    out_ref[0] = y2.reshape(H, W, C)


def basic_block_splitter_add(x_nchw, w1_oihw, bn1, w2_oihw, bn2, eps=1e-5):
    """Forward of BasicBlockSplitter(step='add') with identity shortcut.

    x_nchw: (N, C, H, W) float32.  bn* = (gamma, beta, running_mean, running_var).
    Returns (N, C, H, W) float32.
    """
    N, C, H, W = x_nchw.shape
    assert w1_oihw.shape[0] == C and w2_oihw.shape[0] == C, \
        "identity shortcut requires in_planes == planes"

    # NCHW -> NHWC for the kernel (channels on the lane axis); no spatial pre-pad.
    x = jnp.transpose(x_nchw, (0, 2, 3, 1)).astype(jnp.float32)          # (N,H,W,C)

    # Fold eval-mode BN into the conv: scale goes into the (bf16) weights per
    # output channel, bias stays as a per-channel f32 add in the kernel.
    def fold(w_oihw, bn):
        gamma, beta, mean, var = bn
        scale = gamma / jnp.sqrt(var + eps)                     # (Cout,)
        bias = (beta - mean * scale).astype(jnp.float32)        # (Cout,)
        w = w_oihw.astype(jnp.float32) * scale.reshape(-1, 1, 1, 1)   # OIHW, scaled
        # OIHW -> (kh*3+kw, Cin, Cout), shipped in bf16 for the MXU.
        w = jnp.transpose(w, (2, 3, 1, 0)).reshape(9, w_oihw.shape[1], w_oihw.shape[0])
        return w.astype(jnp.bfloat16), bias.reshape(1, -1)

    w1, b1 = fold(w1_oihw, bn1)
    w2, b2 = fold(w2_oihw, bn2)

    full = lambda shape: pl.BlockSpec(shape, lambda b: (0,) * len(shape))

    out_nhwc = pl.pallas_call(
        basic_block_kernel,
        out_shape=jax.ShapeDtypeStruct((N, H, W, C), jnp.float32),
        grid_spec=pltpu.PrefetchScalarGridSpec(
            num_scalar_prefetch=0,
            grid=(N,),
            in_specs=[
                pl.BlockSpec((1, H, W, C), lambda b: (b, 0, 0, 0)),  # x (single read)
                full((9, C, C)),   # w1 (bf16, BN1 scale folded)
                full((1, C)),      # b1
                full((9, C, C)),   # w2 (bf16, BN2 scale folded)
                full((1, C)),      # b2
            ],
            out_specs=pl.BlockSpec((1, H, W, C), lambda b: (b, 0, 0, 0)),
            scratch_shapes=[pltpu.VMEM((H + 2, W + 2, C), jnp.float32)],
        ),
        compiler_params=pltpu.CompilerParams(
            dimension_semantics=("parallel",),
            vmem_limit_bytes=32 * 1024 * 1024,   # safe on v5e/v6e/v7x
        ),
    )(x, w1, b1, w2, b2)

    # NHWC -> NCHW to match PyTorch output layout
    return jnp.transpose(out_nhwc, (0, 3, 1, 2))


def reference_add(x_nchw, w1_oihw, bn1, w2_oihw, bn2, eps=1e-5):
    """Pure-JAX f32 reference replicating the PyTorch forward (NCHW)."""
    dn = lax.conv_dimension_numbers(x_nchw.shape, w1_oihw.shape,
                                    ('NCHW', 'OIHW', 'NCHW'))

    def conv(x, w):
        return lax.conv_general_dilated(x, w, (1, 1), ((1, 1), (1, 1)),
                                        dimension_numbers=dn)

    def bn(x, params):
        gamma, beta, mean, var = params
        r = lambda v: v.reshape(1, -1, 1, 1)
        return r(gamma) * (x - r(mean)) / jnp.sqrt(r(var) + eps) + r(beta)

    shortcut = x_nchw
    y = conv(x_nchw, w1_oihw)
    y = bn(y, bn1)
    y = jnp.maximum(y, 0.0)
    y = conv(y, w2_oihw)
    y = bn(y, bn2)
    return y + shortcut


if __name__ == "__main__":
    key = jax.random.PRNGKey(0)
    N, C, H, W = 2, 4, 16, 16
    ks = jax.random.split(key, 8)

    x = jax.random.normal(ks[0], (N, C, H, W), jnp.float32)

    w1 = jax.random.normal(ks[1], (C, C, 3, 3), jnp.float32) * 0.1
    w2 = jax.random.normal(ks[2], (C, C, 3, 3), jnp.float32) * 0.1

    bn1 = (1.0 + 0.1 * jax.random.normal(ks[3], (C,), jnp.float32),    # gamma
           0.1 * jax.random.normal(ks[4], (C,), jnp.float32),          # beta
           0.05 * jax.random.normal(ks[5], (C,), jnp.float32),         # running_mean
           jnp.abs(jax.random.normal(ks[6], (C,), jnp.float32)) + 0.5)  # running_var
    bn2 = (1.0 - 0.1 * bn1[0],
           0.2 * bn1[1],
           0.5 * bn1[2],
           jnp.abs(jax.random.normal(ks[7], (C,), jnp.float32)) + 0.5)

    out = basic_block_splitter_add(x, w1, bn1, w2, bn2)
    out = jax.block_until_ready(out)

    ref = reference_add(x, w1, bn1, w2, bn2)
    assert out.shape == (N, C, H, W)
    # Tolerance widened vs. the pure-f32 reference: convolutions run on the MXU
    # in bf16 with the BN scale folded into the bf16 weights (f32 accumulation,
    # f32 bias / relu / shortcut).
    assert jnp.allclose(out, ref, rtol=3e-2, atol=3e-2), "mismatch vs reference"

    print("KERNEL_OK")
</pallas_src>

<mosaic_0001>
module attributes {stable_mosaic.version = 11 : i64} {
  func.func @basic_block_kernel(%arg0: i32, %arg1: memref<1x16x16x4xf32, #tpu.memory_space<vmem>>, %arg2: memref<9x4x4xbf16, #tpu.memory_space<vmem>>, %arg3: memref<1x4xf32, #tpu.memory_space<vmem>>, %arg4: memref<9x4x4xbf16, #tpu.memory_space<vmem>>, %arg5: memref<1x4xf32, #tpu.memory_space<vmem>>, %arg6: memref<1x16x16x4xf32, #tpu.memory_space<vmem>>, %arg7: memref<18x18x4xf32, #tpu.memory_space<vmem>>) attributes {dimension_semantics = [#tpu.dimension_semantics<parallel>], iteration_bounds = array<i64: 2>, scalar_prefetch = 0 : i64, scratch_operands = 1 : i64, tpu.core_type = #tpu.core_type<tc>, window_params = [{transform_indices = @transform_0, window_bounds = array<i64: 1, 16, 16, 4>}, {pipeline_mode = #tpu.pipeline_mode<synchronous>, transform_indices = @transform_1, window_bounds = array<i64: 9, 4, 4>}, {pipeline_mode = #tpu.pipeline_mode<synchronous>, transform_indices = @transform_2, window_bounds = array<i64: 1, 4>}, {pipeline_mode = #tpu.pipeline_mode<synchronous>, transform_indices = @transform_3, window_bounds = array<i64: 9, 4, 4>}, {pipeline_mode = #tpu.pipeline_mode<synchronous>, transform_indices = @transform_4, window_bounds = array<i64: 1, 4>}, {transform_indices = @transform_5, window_bounds = array<i64: 1, 16, 16, 4>}]} {
    %cst = arith.constant 0.000000e+00 : f32
    %0 = vector.broadcast %cst : f32 to vector<1x18x4xf32>
    %cst_0 = arith.constant 0.000000e+00 : f32
    %1 = vector.broadcast %cst_0 : f32 to vector<18x1x4xf32>
    %c0 = arith.constant 0 : index
    %c0_1 = arith.constant 0 : index
    %c0_2 = arith.constant 0 : index
    %2 = vector.load %arg7[%c0, %c0_1, %c0_2] : memref<18x18x4xf32, #tpu.memory_space<vmem>>, vector<1x18x4xf32>
    tpu.vector_store %arg7[%c0, %c0_1, %c0_2], %0 {strides = array<i32>} : memref<18x18x4xf32, #tpu.memory_space<vmem>>, vector<1x18x4xf32>,
    %c17 = arith.constant 17 : index
    %c0_3 = arith.constant 0 : index
    %c0_4 = arith.constant 0 : index
    %3 = vector.load %arg7[%c17, %c0_3, %c0_4] : memref<18x18x4xf32, #tpu.memory_space<vmem>>, vector<1x18x4xf32>
    tpu.vector_store %arg7[%c17, %c0_3, %c0_4], %0 {strides = array<i32>} : memref<18x18x4xf32, #tpu.memory_space<vmem>>, vector<1x18x4xf32>,
    %c0_5 = arith.constant 0 : index
    %c0_6 = arith.constant 0 : index
    %c0_7 = arith.constant 0 : index
    %4 = vector.load %arg7[%c0_5, %c0_6, %c0_7] : memref<18x18x4xf32, #tpu.memory_space<vmem>>, vector<18x1x4xf32>
    tpu.vector_store %arg7[%c0_5, %c0_6, %c0_7], %1 {strides = array<i32>} : memref<18x18x4xf32, #tpu.memory_space<vmem>>, vector<18x1x4xf32>,
    %c0_8 = arith.constant 0 : index
    %c17_9 = arith.constant 17 : index
    %c0_10 = arith.constant 0 : index
    %5 = vector.load %arg7[%c0_8, %c17_9, %c0_10] : memref<18x18x4xf32, #tpu.memory_space<vmem>>, vector<18x1x4xf32>
    tpu.vector_store %arg7[%c0_8, %c17_9, %c0_10], %1 {strides = array<i32>} : memref<18x18x4xf32, #tpu.memory_space<vmem>>, vector<18x1x4xf32>,
    %c0_11 = arith.constant 0 : index
    %c0_12 = arith.constant 0 : index
    %c0_13 = arith.constant 0 : index
    %c0_14 = arith.constant 0 : index
    %6 = vector.load %arg1[%c0_11, %c0_12, %c0_13, %c0_14] : memref<1x16x16x4xf32, #tpu.memory_space<vmem>>, vector<1x16x16x4xf32>
    %7 = vector.shape_cast %6 : vector<1x16x16x4xf32> to vector<16x16x4xf32>
    %c1 = arith.constant 1 : index
    %c1_15 = arith.constant 1 : index
    %c0_16 = arith.constant 0 : index
    %8 = vector.load %arg7[%c1, %c1_15, %c0_16] : memref<18x18x4xf32, #tpu.memory_space<vmem>>, vector<16x16x4xf32>
    tpu.vector_store %arg7[%c1, %c1_15, %c0_16], %7 {strides = array<i32>} : memref<18x18x4xf32, #tpu.memory_space<vmem>>, vector<16x16x4xf32>,
    %cst_17 = arith.constant 0.000000e+00 : f32
    %9 = vector.broadcast %cst_17 : f32 to vector<256x4xf32>
    %c0_18 = arith.constant 0 : index
    %c0_19 = arith.constant 0 : index
    %c0_20 = arith.constant 0 : index
    %10 = vector.load %arg7[%c0_18, %c0_19, %c0_20] : memref<18x18x4xf32, #tpu.memory_space<vmem>>, vector<16x16x4xf32>
    %11 = vector.shape_cast %10 : vector<16x16x4xf32> to vector<256x4xf32>
    %12 = arith.truncf %11 : vector<256x4xf32> to vector<256x4xbf16>
    %c0_21 = arith.constant 0 : index
    %c0_22 = arith.constant 0 : index
    %c0_23 = arith.constant 0 : index
    %13 = vector.load %arg2[%c0_21, %c0_22, %c0_23] : memref<9x4x4xbf16, #tpu.memory_space<vmem>>, vector<1x4x4xbf16>
    %14 = vector.shape_cast %13 : vector<1x4x4xbf16> to vector<4x4xbf16>
    %cst_24 = arith.constant dense<0.000000e+00> : vector<256x4xf32>
    %15 = tpu.matmul %12, %14, %cst_24 {dimension_numbers = #tpu.dot_dimension_numbers<[1], [0], [0], [1], [0, 0, 1, 1], [], []>} : vector<256x4xbf16>, vector<4x4xbf16>, vector<256x4xf32> -> vector<256x4xf32>
    %16 = arith.addf %9, %15 : vector<256x4xf32>
    %c0_25 = arith.constant 0 : index
    %c1_26 = arith.constant 1 : index
    %c0_27 = arith.constant 0 : index
    %17 = vector.load %arg7[%c0_25, %c1_26, %c0_27] : memref<18x18x4xf32, #tpu.memory_space<vmem>>, vector<16x16x4xf32>
    %18 = vector.shape_cast %17 : vector<16x16x4xf32> to vector<256x4xf32>
    %19 = arith.truncf %18 : vector<256x4xf32> to vector<256x4xbf16>
    %c1_28 = arith.constant 1 : index
    %c0_29 = arith.constant 0 : index
    %c0_30 = arith.constant 0 : index
    %20 = vector.load %arg2[%c1_28, %c0_29, %c0_30] : memref<9x4x4xbf16, #tpu.memory_space<vmem>>, vector<1x4x4xbf16>
    %21 = vector.shape_cast %20 : vector<1x4x4xbf16> to vector<4x4xbf16>
    %cst_31 = arith.constant dense<0.000000e+00> : vector<256x4xf32>
    %22 = tpu.matmul %19, %21, %cst_31 {dimension_numbers = #tpu.dot_dimension_numbers<[1], [0], [0], [1], [0, 0, 1, 1], [], []>} : vector<256x4xbf16>, vector<4x4xbf16>, vector<256x4xf32> -> vector<256x4xf32>
    %23 = arith.addf %16, %22 : vector<256x4xf32>
    %c0_32 = arith.constant 0 : index
    %c2 = arith.constant 2 : index
    %c0_33 = arith.constant 0 : index
    %24 = vector.load %arg7[%c0_32, %c2, %c0_33] : memref<18x18x4xf32, #tpu.memory_space<vmem>>, vector<16x16x4xf32>
    %25 = vector.shape_cast %24 : vector<16x16x4xf32> to vector<256x4xf32>
    %26 = arith.truncf %25 : vector<256x4xf32> to vector<256x4xbf16>
    %c2_34 = arith.constant 2 : index
    %c0_35 = arith.constant 0 : index
    %c0_36 = arith.constant 0 : index
    %27 = vector.load %arg2[%c2_34, %c0_35, %c0_36] : memref<9x4x4xbf16, #tpu.memory_space<vmem>>, vector<1x4x4xbf16>
    %28 = vector.shape_cast %27 : vector<1x4x4xbf16> to vector<4x4xbf16>
    %cst_37 = arith.constant dense<0.000000e+00> : vector<256x4xf32>
    %29 = tpu.matmul %26, %28, %cst_37 {dimension_numbers = #tpu.dot_dimension_numbers<[1], [0], [0], [1], [0, 0, 1, 1], [], []>} : vector<256x4xbf16>, vector<4x4xbf16>, vector<256x4xf32> -> vector<256x4xf32>
    %30 = arith.addf %23, %29 : vector<256x4xf32>
    %c1_38 = arith.constant 1 : index
    %c0_39 = arith.constant 0 : index
    %c0_40 = arith.constant 0 : index
    %31 = vector.load %arg7[%c1_38, %c0_39, %c0_40] : memref<18x18x4xf32, #tpu.memory_space<vmem>>, vector<16x16x4xf32>
    %32 = vector.shape_cast %31 : vector<16x16x4xf32> to vector<256x4xf32>
    %33 = arith.truncf %32 : vector<256x4xf32> to vector<256x4xbf16>
    %c3 = arith.constant 3 : index
    %c0_41 = arith.constant 0 : index
    %c0_42 = arith.constant 0 : index
    %34 = vector.load %arg2[%c3, %c0_41, %c0_42] : memref<9x4x4xbf16, #tpu.memory_space<vmem>>, vector<1x4x4xbf16>
    %35 = vector.shape_cast %34 : vector<1x4x4xbf16> to vector<4x4xbf16>
    %cst_43 = arith.constant dense<0.000000e+00> : vector<256x4xf32>
    %36 = tpu.matmul %33, %35, %cst_43 {dimension_numbers = #tpu.dot_dimension_numbers<[1], [0], [0], [1], [0, 0, 1, 1], [], []>} : vector<256x4xbf16>, vector<4x4xbf16>, vector<256x4xf32> -> vector<256x4xf32>
    %37 = arith.addf %30, %36 : vector<256x4xf32>
    %c1_44 = arith.constant 1 : index
    %c1_45 = arith.constant 1 : index
    %c0_46 = arith.constant 0 : index
    %38 = vector.load %arg7[%c1_44, %c1_45, %c0_46] : memref<18x18x4xf32, #tpu.memory_space<vmem>>, vector<16x16x4xf32>
    %39 = vector.shape_cast %38 : vector<16x16x4xf32> to vector<256x4xf32>
    %40 = arith.truncf %39 : vector<256x4xf32> to vector<256x4xbf16>
    %c4 = arith.constant 4 : index
    %c0_47 = arith.constant 0 : index
    %c0_48 = arith.constant 0 : index
    %41 = vector.load %arg2[%c4, %c0_47, %c0_48] : memref<9x4x4xbf16, #tpu.memory_space<vmem>>, vector<1x4x4xbf16>
    %42 = vector.shape_cast %41 : vector<1x4x4xbf16> to vector<4x4xbf16>
    %cst_49 = arith.constant dense<0.000000e+00> : vector<256x4xf32>
    %43 = tpu.matmul %40, %42, %cst_49 {dimension_numbers = #tpu.dot_dimension_numbers<[1], [0], [0], [1], [0, 0, 1, 1], [], []>} : vector<256x4xbf16>, vector<4x4xbf16>, vector<256x4xf32> -> vector<256x4xf32>
    %44 = arith.addf %37, %43 : vector<256x4xf32>
    %c1_50 = arith.constant 1 : index
    %c2_51 = arith.constant 2 : index
    %c0_52 = arith.constant 0 : index
    %45 = vector.load %arg7[%c1_50, %c2_51, %c0_52] : memref<18x18x4xf32, #tpu.memory_space<vmem>>, vector<16x16x4xf32>
    %46 = vector.shape_cast %45 : vector<16x16x4xf32> to vector<256x4xf32>
    %47 = arith.truncf %46 : vector<256x4xf32> to vector<256x4xbf16>
    %c5 = arith.constant 5 : index
    %c0_53 = arith.constant 0 : index
    %c0_54 = arith.constant 0 : index
    %48 = vector.load %arg2[%c5, %c0_53, %c0_54] : memref<9x4x4xbf16, #tpu.memory_space<vmem>>, vector<1x4x4xbf16>
    %49 = vector.shape_cast %48 : vector<1x4x4xbf16> to vector<4x4xbf16>
    %cst_55 = arith.constant dense<0.000000e+00> : vector<256x4xf32>
    %50 = tpu.matmul %47, %49, %cst_55 {dimension_numbers = #tpu.dot_dimension_numbers<[1], [0], [0], [1], [0, 0, 1, 1], [], []>} : vector<256x4xbf16>, vector<4x4xbf16>, vector<256x4xf32> -> vector<256x4xf32>
    %51 = arith.addf %44, %50 : vector<256x4xf32>
    %c2_56 = arith.constant 2 : index
    %c0_57 = arith.constant 0 : index
    %c0_58 = arith.constant 0 : index
    %52 = vector.load %arg7[%c2_56, %c0_57, %c0_58] : memref<18x18x4xf32, #tpu.memory_space<vmem>>, vector<16x16x4xf32>
    %53 = vector.shape_cast %52 : vector<16x16x4xf32> to vector<256x4xf32>
    %54 = arith.truncf %53 : vector<256x4xf32> to vector<256x4xbf16>
    %c6 = arith.constant 6 : index
    %c0_59 = arith.constant 0 : index
    %c0_60 = arith.constant 0 : index
    %55 = vector.load %arg2[%c6, %c0_59, %c0_60] : memref<9x4x4xbf16, #tpu.memory_space<vmem>>, vector<1x4x4xbf16>
    %56 = vector.shape_cast %55 : vector<1x4x4xbf16> to vector<4x4xbf16>
    %cst_61 = arith.constant dense<0.000000e+00> : vector<256x4xf32>
    %57 = tpu.matmul %54, %56, %cst_61 {dimension_numbers = #tpu.dot_dimension_numbers<[1], [0], [0], [1], [0, 0, 1, 1], [], []>} : vector<256x4xbf16>, vector<4x4xbf16>, vector<256x4xf32> -> vector<256x4xf32>
    %58 = arith.addf %51, %57 : vector<256x4xf32>
    %c2_62 = arith.constant 2 : index
    %c1_63 = arith.constant 1 : index
    %c0_64 = arith.constant 0 : index
    %59 = vector.load %arg7[%c2_62, %c1_63, %c0_64] : memref<18x18x4xf32, #tpu.memory_space<vmem>>, vector<16x16x4xf32>
    %60 = vector.shape_cast %59 : vector<16x16x4xf32> to vector<256x4xf32>
    %61 = arith.truncf %60 : vector<256x4xf32> to vector<256x4xbf16>
    %c7 = arith.constant 7 : index
    %c0_65 = arith.constant 0 : index
    %c0_66 = arith.constant 0 : index
    %62 = vector.load %arg2[%c7, %c0_65, %c0_66] : memref<9x4x4xbf16, #tpu.memory_space<vmem>>, vector<1x4x4xbf16>
    %63 = vector.shape_cast %62 : vector<1x4x4xbf16> to vector<4x4xbf16>
    %cst_67 = arith.constant dense<0.000000e+00> : vector<256x4xf32>
    %64 = tpu.matmul %61, %63, %cst_67 {dimension_numbers = #tpu.dot_dimension_numbers<[1], [0], [0], [1], [0, 0, 1, 1], [], []>} : vector<256x4xbf16>, vector<4x4xbf16>, vector<256x4xf32> -> vector<256x4xf32>
    %65 = arith.addf %58, %64 : vector<256x4xf32>
    %c2_68 = arith.constant 2 : index
    %c2_69 = arith.constant 2 : index
    %c0_70 = arith.constant 0 : index
    %66 = vector.load %arg7[%c2_68, %c2_69, %c0_70] : memref<18x18x4xf32, #tpu.memory_space<vmem>>, vector<16x16x4xf32>
    %67 = vector.shape_cast %66 : vector<16x16x4xf32> to vector<256x4xf32>
    %68 = arith.truncf %67 : vector<256x4xf32> to vector<256x4xbf16>
    %c8 = arith.constant 8 : index
    %c0_71 = arith.constant 0 : index
    %c0_72 = arith.constant 0 : index
    %69 = vector.load %arg2[%c8, %c0_71, %c0_72] : memref<9x4x4xbf16, #tpu.memory_space<vmem>>, vector<1x4x4xbf16>
    %70 = vector.shape_cast %69 : vector<1x4x4xbf16> to vector<4x4xbf16>
    %cst_73 = arith.constant dense<0.000000e+00> : vector<256x4xf32>
    %71 = tpu.matmul %68, %70, %cst_73 {dimension_numbers = #tpu.dot_dimension_numbers<[1], [0], [0], [1], [0, 0, 1, 1], [], []>} : vector<256x4xbf16>, vector<4x4xbf16>, vector<256x4xf32> -> vector<256x4xf32>
    %72 = arith.addf %65, %71 : vector<256x4xf32>
    %c0_74 = arith.constant 0 : index
    %c0_75 = arith.constant 0 : index
    %73 = vector.load %arg3[%c0_74, %c0_75] : memref<1x4xf32, #tpu.memory_space<vmem>>, vector<1x4xf32>
    %74 = vector.shape_cast %73 : vector<1x4xf32> to vector<4xf32>
    %75 = vector.shape_cast %74 : vector<4xf32> to vector<1x4xf32>
    %76 = vector.broadcast %75 : vector<1x4xf32> to vector<256x4xf32>
    %77 = arith.addf %72, %76 : vector<256x4xf32>
    %cst_76 = arith.constant 0.000000e+00 : f32
    %78 = vector.broadcast %cst_76 : f32 to vector<256x4xf32>
    %79 = arith.maximumf %77, %78 : vector<256x4xf32>
    %80 = vector.shape_cast %79 : vector<256x4xf32> to vector<16x16x4xf32>
    %c1_77 = arith.constant 1 : index
    %c1_78 = arith.constant 1 : index
    %c0_79 = arith.constant 0 : index
    %81 = vector.load %arg7[%c1_77, %c1_78, %c0_79] : memref<18x18x4xf32, #tpu.memory_space<vmem>>, vector<16x16x4xf32>
    tpu.vector_store %arg7[%c1_77, %c1_78, %c0_79], %80 {strides = array<i32>} : memref<18x18x4xf32, #tpu.memory_space<vmem>>, vector<16x16x4xf32>,
    %cst_80 = arith.constant 0.000000e+00 : f32
    %82 = vector.broadcast %cst_80 : f32 to vector<256x4xf32>
    %c0_81 = arith.constant 0 : index
    %c0_82 = arith.constant 0 : index
    %c0_83 = arith.constant 0 : index
    %83 = vector.load %arg7[%c0_81, %c0_82, %c0_83] : memref<18x18x4xf32, #tpu.memory_space<vmem>>, vector<16x16x4xf32>
    %84 = vector.shape_cast %83 : vector<16x16x4xf32> to vector<256x4xf32>
    %85 = arith.truncf %84 : vector<256x4xf32> to vector<256x4xbf16>
    %c0_84 = arith.constant 0 : index
    %c0_85 = arith.constant 0 : index
    %c0_86 = arith.constant 0 : index
    %86 = vector.load %arg4[%c0_84, %c0_85, %c0_86] : memref<9x4x4xbf16, #tpu.memory_space<vmem>>, vector<1x4x4xbf16>
    %87 = vector.shape_cast %86 : vector<1x4x4xbf16> to vector<4x4xbf16>
    %cst_87 = arith.constant dense<0.000000e+00> : vector<256x4xf32>
    %88 = tpu.matmul %85, %87, %cst_87 {dimension_numbers = #tpu.dot_dimension_numbers<[1], [0], [0], [1], [0, 0, 1, 1], [], []>} : vector<256x4xbf16>, vector<4x4xbf16>, vector<256x4xf32> -> vector<256x4xf32>
    %89 = arith.addf %82, %88 : vector<256x4xf32>
    %c0_88 = arith.constant 0 : index
    %c1_89 = arith.constant 1 : index
    %c0_90 = arith.constant 0 : index
    %90 = vector.load %arg7[%c0_88, %c1_89, %c0_90] : memref<18x18x4xf32, #tpu.memory_space<vmem>>, vector<16x16x4xf32>
    %91 = vector.shape_cast %90 : vector<16x16x4xf32> to vector<256x4xf32>
    %92 = arith.truncf %91 : vector<256x4xf32> to vector<256x4xbf16>
    %c1_91 = arith.constant 1 : index
    %c0_92 = arith.constant 0 : index
    %c0_93 = arith.constant 0 : index
    %93 = vector.load %arg4[%c1_91, %c0_92, %c0_93] : memref<9x4x4xbf16, #tpu.memory_space<vmem>>, vector<1x4x4xbf16>
    %94 = vector.shape_cast %93 : vector<1x4x4xbf16> to vector<4x4xbf16>
    %cst_94 = arith.constant dense<0.000000e+00> : vector<256x4xf32>
    %95 = tpu.matmul %92, %94, %cst_94 {dimension_numbers = #tpu.dot_dimension_numbers<[1], [0], [0], [1], [0, 0, 1, 1], [], []>} : vector<256x4xbf16>, vector<4x4xbf16>, vector<256x4xf32> -> vector<256x4xf32>
    %96 = arith.addf %89, %95 : vector<256x4xf32>
    %c0_95 = arith.constant 0 : index
    %c2_96 = arith.constant 2 : index
    %c0_97 = arith.constant 0 : index
    %97 = vector.load %arg7[%c0_95, %c2_96, %c0_97] : memref<18x18x4xf32, #tpu.memory_space<vmem>>, vector<16x16x4xf32>
    %98 = vector.shape_cast %97 : vector<16x16x4xf32> to vector<256x4xf32>
    %99 = arith.truncf %98 : vector<256x4xf32> to vector<256x4xbf16>
    %c2_98 = arith.constant 2 : index
    %c0_99 = arith.constant 0 : index
    %c0_100 = arith.constant 0 : index
    %100 = vector.load %arg4[%c2_98, %c0_99, %c0_100] : memref<9x4x4xbf16, #tpu.memory_space<vmem>>, vector<1x4x4xbf16>
    %101 = vector.shape_cast %100 : vector<1x4x4xbf16> to vector<4x4xbf16>
    %cst_101 = arith.constant dense<0.000000e+00> : vector<256x4xf32>
    %102 = tpu.matmul %99, %101, %cst_101 {dimension_numbers = #tpu.dot_dimension_numbers<[1], [0], [0], [1], [0, 0, 1, 1], [], []>} : vector<256x4xbf16>, vector<4x4xbf16>, vector<256x4xf32> -> vector<256x4xf32>
    %103 = arith.addf %96, %102 : vector<256x4xf32>
    %c1_102 = arith.constant 1 : index
    %c0_103 = arith.constant 0 : index
    %c0_104 = arith.constant 0 : index
    %104 = vector.load %arg7[%c1_102, %c0_103, %c0_104] : memref<18x18x4xf32, #tpu.memory_space<vmem>>, vector<16x16x4xf32>
    %105 = vector.shape_cast %104 : vector<16x16x4xf32> to vector<256x4xf32>
    %106 = arith.truncf %105 : vector<256x4xf32> to vector<256x4xbf16>
    %c3_105 = arith.constant 3 : index
    %c0_106 = arith.constant 0 : index
    %c0_107 = arith.constant 0 : index
    %107 = vector.load %arg4[%c3_105, %c0_106, %c0_107] : memref<9x4x4xbf16, #tpu.memory_space<vmem>>, vector<1x4x4xbf16>
    %108 = vector.shape_cast %107 : vector<1x4x4xbf16> to vector<4x4xbf16>
    %cst_108 = arith.constant dense<0.000000e+00> : vector<256x4xf32>
    %109 = tpu.matmul %106, %108, %cst_108 {dimension_numbers = #tpu.dot_dimension_numbers<[1], [0], [0], [1], [0, 0, 1, 1], [], []>} : vector<256x4xbf16>, vector<4x4xbf16>, vector<256x4xf32> -> vector<256x4xf32>
    %110 = arith.addf %103, %109 : vector<256x4xf32>
    %c1_109 = arith.constant 1 : index
    %c1_110 = arith.constant 1 : index
    %c0_111 = arith.constant 0 : index
    %111 = vector.load %arg7[%c1_109, %c1_110, %c0_111] : memref<18x18x4xf32, #tpu.memory_space<vmem>>, vector<16x16x4xf32>
    %112 = vector.shape_cast %111 : vector<16x16x4xf32> to vector<256x4xf32>
    %113 = arith.truncf %112 : vector<256x4xf32> to vector<256x4xbf16>
    %c4_112 = arith.constant 4 : index
    %c0_113 = arith.constant 0 : index
    %c0_114 = arith.constant 0 : index
    %114 = vector.load %arg4[%c4_112, %c0_113, %c0_114] : memref<9x4x4xbf16, #tpu.memory_space<vmem>>, vector<1x4x4xbf16>
    %115 = vector.shape_cast %114 : vector<1x4x4xbf16> to vector<4x4xbf16>
    %cst_115 = arith.constant dense<0.000000e+00> : vector<256x4xf32>
    %116 = tpu.matmul %113, %115, %cst_115 {dimension_numbers = #tpu.dot_dimension_numbers<[1], [0], [0], [1], [0, 0, 1, 1], [], []>} : vector<256x4xbf16>, vector<4x4xbf16>, vector<256x4xf32> -> vector<256x4xf32>
    %117 = arith.addf %110, %116 : vector<256x4xf32>
    %c1_116 = arith.constant 1 : index
    %c2_117 = arith.constant 2 : index
    %c0_118 = arith.constant 0 : index
    %118 = vector.load %arg7[%c1_116, %c2_117, %c0_118] : memref<18x18x4xf32, #tpu.memory_space<vmem>>, vector<16x16x4xf32>
    %119 = vector.shape_cast %118 : vector<16x16x4xf32> to vector<256x4xf32>
    %120 = arith.truncf %119 : vector<256x4xf32> to vector<256x4xbf16>
    %c5_119 = arith.constant 5 : index
    %c0_120 = arith.constant 0 : index
    %c0_121 = arith.constant 0 : index
    %121 = vector.load %arg4[%c5_119, %c0_120, %c0_121] : memref<9x4x4xbf16, #tpu.memory_space<vmem>>, vector<1x4x4xbf16>
    %122 = vector.shape_cast %121 : vector<1x4x4xbf16> to vector<4x4xbf16>
    %cst_122 = arith.constant dense<0.000000e+00> : vector<256x4xf32>
    %123 = tpu.matmul %120, %122, %cst_122 {dimension_numbers = #tpu.dot_dimension_numbers<[1], [0], [0], [1], [0, 0, 1, 1], [], []>} : vector<256x4xbf16>, vector<4x4xbf16>, vector<256x4xf32> -> vector<256x4xf32>
    %124 = arith.addf %117, %123 : vector<256x4xf32>
    %c2_123 = arith.constant 2 : index
    %c0_124 = arith.constant 0 : index
    %c0_125 = arith.constant 0 : index
    %125 = vector.load %arg7[%c2_123, %c0_124, %c0_125] : memref<18x18x4xf32, #tpu.memory_space<vmem>>, vector<16x16x4xf32>
    %126 = vector.shape_cast %125 : vector<16x16x4xf32> to vector<256x4xf32>
    %127 = arith.truncf %126 : vector<256x4xf32> to vector<256x4xbf16>
    %c6_126 = arith.constant 6 : index
    %c0_127 = arith.constant 0 : index
    %c0_128 = arith.constant 0 : index
    %128 = vector.load %arg4[%c6_126, %c0_127, %c0_128] : memref<9x4x4xbf16, #tpu.memory_space<vmem>>, vector<1x4x4xbf16>
    %129 = vector.shape_cast %128 : vector<1x4x4xbf16> to vector<4x4xbf16>
    %cst_129 = arith.constant dense<0.000000e+00> : vector<256x4xf32>
    %130 = tpu.matmul %127, %129, %cst_129 {dimension_numbers = #tpu.dot_dimension_numbers<[1], [0], [0], [1], [0, 0, 1, 1], [], []>} : vector<256x4xbf16>, vector<4x4xbf16>, vector<256x4xf32> -> vector<256x4xf32>
    %131 = arith.addf %124, %130 : vector<256x4xf32>
    %c2_130 = arith.constant 2 : index
    %c1_131 = arith.constant 1 : index
    %c0_132 = arith.constant 0 : index
    %132 = vector.load %arg7[%c2_130, %c1_131, %c0_132] : memref<18x18x4xf32, #tpu.memory_space<vmem>>, vector<16x16x4xf32>
    %133 = vector.shape_cast %132 : vector<16x16x4xf32> to vector<256x4xf32>
    %134 = arith.truncf %133 : vector<256x4xf32> to vector<256x4xbf16>
    %c7_133 = arith.constant 7 : index
    %c0_134 = arith.constant 0 : index
    %c0_135 = arith.constant 0 : index
    %135 = vector.load %arg4[%c7_133, %c0_134, %c0_135] : memref<9x4x4xbf16, #tpu.memory_space<vmem>>, vector<1x4x4xbf16>
    %136 = vector.shape_cast %135 : vector<1x4x4xbf16> to vector<4x4xbf16>
    %cst_136 = arith.constant dense<0.000000e+00> : vector<256x4xf32>
    %137 = tpu.matmul %134, %136, %cst_136 {dimension_numbers = #tpu.dot_dimension_numbers<[1], [0], [0], [1], [0, 0, 1, 1], [], []>} : vector<256x4xbf16>, vector<4x4xbf16>, vector<256x4xf32> -> vector<256x4xf32>
    %138 = arith.addf %131, %137 : vector<256x4xf32>
    %c2_137 = arith.constant 2 : index
    %c2_138 = arith.constant 2 : index
    %c0_139 = arith.constant 0 : index
    %139 = vector.load %arg7[%c2_137, %c2_138, %c0_139] : memref<18x18x4xf32, #tpu.memory_space<vmem>>, vector<16x16x4xf32>
    %140 = vector.shape_cast %139 : vector<16x16x4xf32> to vector<256x4xf32>
    %141 = arith.truncf %140 : vector<256x4xf32> to vector<256x4xbf16>
    %c8_140 = arith.constant 8 : index
    %c0_141 = arith.constant 0 : index
    %c0_142 = arith.constant 0 : index
    %142 = vector.load %arg4[%c8_140, %c0_141, %c0_142] : memref<9x4x4xbf16, #tpu.memory_space<vmem>>, vector<1x4x4xbf16>
    %143 = vector.shape_cast %142 : vector<1x4x4xbf16> to vector<4x4xbf16>
    %cst_143 = arith.constant dense<0.000000e+00> : vector<256x4xf32>
    %144 = tpu.matmul %141, %143, %cst_143 {dimension_numbers = #tpu.dot_dimension_numbers<[1], [0], [0], [1], [0, 0, 1, 1], [], []>} : vector<256x4xbf16>, vector<4x4xbf16>, vector<256x4xf32> -> vector<256x4xf32>
    %145 = arith.addf %138, %144 : vector<256x4xf32>
    %c0_144 = arith.constant 0 : index
    %c0_145 = arith.constant 0 : index
    %146 = vector.load %arg5[%c0_144, %c0_145] : memref<1x4xf32, #tpu.memory_space<vmem>>, vector<1x4xf32>
    %147 = vector.shape_cast %146 : vector<1x4xf32> to vector<4xf32>
    %148 = vector.shape_cast %147 : vector<4xf32> to vector<1x4xf32>
    %149 = vector.broadcast %148 : vector<1x4xf32> to vector<256x4xf32>
    %150 = arith.addf %145, %149 : vector<256x4xf32>
    %151 = vector.shape_cast %7 : vector<16x16x4xf32> to vector<256x4xf32>
    %152 = arith.addf %150, %151 : vector<256x4xf32>
    %153 = vector.shape_cast %152 : vector<256x4xf32> to vector<16x16x4xf32>
    %c0_146 = arith.constant 0 : index
    %c0_147 = arith.constant 0 : index
    %c0_148 = arith.constant 0 : index
    %c0_149 = arith.constant 0 : index
    %154 = vector.load %arg6[%c0_146, %c0_147, %c0_148, %c0_149] : memref<1x16x16x4xf32, #tpu.memory_space<vmem>>, vector<1x16x16x4xf32>
    %155 = vector.shape_cast %154 : vector<1x16x16x4xf32> to vector<16x16x4xf32>
    %156 = vector.shape_cast %153 : vector<16x16x4xf32> to vector<1x16x16x4xf32>
    tpu.vector_store %arg6[%c0_146, %c0_147, %c0_148, %c0_149], %156 {strides = array<i32>} : memref<1x16x16x4xf32, #tpu.memory_space<vmem>>, vector<1x16x16x4xf32>,
    return
  }
  func.func @transform_0(%arg0: i32) -> (i32, i32, i32, i32) {
    %c0_i32 = arith.constant 0 : i32
    %c0_i32_0 = arith.constant 0 : i32
    %c0_i32_1 = arith.constant 0 : i32
    %c0_i32_2 = arith.constant 0 : i32
    return %arg0, %c0_i32, %c0_i32_0, %c0_i32_1 : i32, i32, i32, i32
  }
  func.func @transform_1(%arg0: i32) -> (i32, i32, i32) {
    %c0_i32 = arith.constant 0 : i32
    %c0_i32_0 = arith.constant 0 : i32
    %c0_i32_1 = arith.constant 0 : i32
    %c0_i32_2 = arith.constant 0 : i32
    return %c0_i32, %c0_i32_0, %c0_i32_1 : i32, i32, i32
  }
  func.func @transform_2(%arg0: i32) -> (i32, i32) {
    %c0_i32 = arith.constant 0 : i32
    %c0_i32_0 = arith.constant 0 : i32
    %c0_i32_1 = arith.constant 0 : i32
    return %c0_i32, %c0_i32_0 : i32, i32
  }
  func.func @transform_3(%arg0: i32) -> (i32, i32, i32) {
    %c0_i32 = arith.constant 0 : i32
    %c0_i32_0 = arith.constant 0 : i32
    %c0_i32_1 = arith.constant 0 : i32
    %c0_i32_2 = arith.constant 0 : i32
    return %c0_i32, %c0_i32_0, %c0_i32_1 : i32, i32, i32
  }
  func.func @transform_4(%arg0: i32) -> (i32, i32) {
    %c0_i32 = arith.constant 0 : i32
    %c0_i32_0 = arith.constant 0 : i32
    %c0_i32_1 = arith.constant 0 : i32
    return %c0_i32, %c0_i32_0 : i32, i32
  }
  func.func @transform_5(%arg0: i32) -> (i32, i32, i32, i32) {
    %c0_i32 = arith.constant 0 : i32
    %c0_i32_0 = arith.constant 0 : i32
    %c0_i32_1 = arith.constant 0 : i32
    %c0_i32_2 = arith.constant 0 : i32
    return %arg0, %c0_i32, %c0_i32_0, %c0_i32_1 : i32, i32, i32, i32
  }
}

</mosaic_0001>

<bundles_post_ra>
// kernel: tpu_custom_call.1
= control target key start
LH: loop header
LB: loop body
LE: loop exit
PB: predicated region body
PF: predicated region fallthrough
CT: control target
= control target key end

     0   :  { %s7577_s18 = smov 0   ;;  %s8865_s0 = inlined_call_operand.vmem [shape: f32[2,16,16,4], index: 0, kind: input, shape index: {}]   ;;  %s8866_s1 = inlined_call_operand.vmem [shape: bf16[9,4,4], index: 1, kind: input, shape index: {}]   ;;  %s8867_s2 = inlined_call_operand.vmem [shape: f32[1,4], index: 2, kind: input, shape index: {}]   ;;  %s8868_s3 = inlined_call_operand.vmem [shape: bf16[9,4,4], index: 3, kind: input, shape index: {}]   ;;  %s8869_s4 = inlined_call_operand.vmem [shape: f32[1,4], index: 4, kind: input, shape index: {}]   ;;  %s8870_s5 = inlined_call_operand.vmem [shape: f32[2,16,16,4], index: 5, kind: output, shape index: {}]  }
   0x1 LB: > { %s5762_s19 = sadd.s32 4294967295, %s7544_s18   ;;  %p5766_p0 = scmp.ge.s32.totalorder %s7544_s18, 1  ;;  %s7544_s18 = sphi %s7577_s18, %s15_s18  }
   0x2   : > { %p187_p1 = scmp.lt.s32.totalorder %s7544_s18, 3 }
   0x4   : > { %p188_p2 = pnand %p5766_p0, %p187_p1 }
   0x6   : > { %191 = sbr.rel (%p188_p2) target bundleno = 1574 (0x626), region = 40 }
   0xd   : > { %v5771_v0 = vld [vmem:[%s8866_s1 + $0x2] sm:$0x3]  ;;  %vm484_vm0 = vcmask 1041408   ;;  %vm226_vm1 = vcmask 31744   ;;  %vm229_vm2 = vcmask 25600   ;;  %v7546_v2 = vmov 0.0  }
   0xe   : > { %7511 = vmatprep.subr.msk.bf16.mxu0 %vm484_vm0, %v5771_v0  ;;  %v486_v1 = vsel %vm484_vm0, %v5771_v0, 0  ;;  %227 = vst.msk [vmem:[#allocation2] sm:$0xff] %vm226_vm1, %v7546_v2  ;;  %228 = vst.msk [vmem:[#allocation2 + $0x8] sm:$0xff] %vm226_vm1, %v7546_v2  ;;  %v7597_v3 = vld [vmem:[%s8866_s1] sm:$0x3]  ;;  %p7601_p3 = scmp.lt.s32.totalorder %s5762_s19, 1 }
   0xf   : > { %230 = vst.msk [vmem:[#allocation2 + $0x10] sm:$0x3] %vm229_vm2, %v7546_v2  ;;  %234 = vst.msk [vmem:[#allocation2 + $0x1a8] sm:$0x3] %vm229_vm2, %v7546_v2  ;;  %vm235_vm3 = vcmask 24576   ;;  %6388 = vmatpush3.bf16.msra.mxu0 %v486_v1  ;;  %v698_v33 = vsel %vm484_vm0, %v7597_v3, 0 }
  0x10   : > { %232 = vst.msk [vmem:[#allocation2 + $0x198] sm:$0xff] %vm226_vm1, %v7546_v2  ;;  %233 = vst.msk [vmem:[#allocation2 + $0x1a0] sm:$0xff] %vm226_vm1, %v7546_v2  ;;  %7512 = vmatprep.subr.msk.bf16.mxu0 %vm484_vm0, %v7597_v3  ;;  %s8936_s19 = smov (!%p7601_p3, %s5762_s19), 1  ;;  %v7787_v38 = vld [vmem:[%s8866_s1 + $0x4] sm:$0x3] }
  0x11   : > { %236 = vst.msk [vmem:[#allocation2] sm:$0x1] %vm235_vm3, %v7546_v2  ;;  %237 = vst.msk [vmem:[#allocation2 + $0x18] sm:$0x1] %vm235_vm3, %v7546_v2  ;;  %s6079_s25 = sshll.u32 %s8936_s19, 8 }
  0x12   : > { %238 = vst.msk [vmem:[#allocation2 + $0x30] sm:$0x1] %vm235_vm3, %v7546_v2  ;;  %239 = vst.msk [vmem:[#allocation2 + $0x48] sm:$0x1] %vm235_vm3, %v7546_v2  ;;  %s7655_s28 = scalar_lea.vmem %s8865_s0, %s6079_s25  ;;  %s8733_s22 = scalar_lea.vmem %s8870_s5, %s6079_s25 }
  0x13   : > { %240 = vst.msk [vmem:[#allocation2 + $0x60] sm:$0x1] %vm235_vm3, %v7546_v2  ;;  %241 = vst.msk [vmem:[#allocation2 + $0x78] sm:$0x1] %vm235_vm3, %v7546_v2  ;;  %v7658_v4 = vld [vmem:[%s7655_s28] sm:$0xff]  ;;  %v7661_v5 = vld [vmem:[%s7655_s28 + $0x8] sm:$0xff] }
  0x14   : > { %242 = vst.msk [vmem:[#allocation2 + $0x90] sm:$0x1] %vm235_vm3, %v7546_v2  ;;  %243 = vst.msk [vmem:[#allocation2 + $0xa8] sm:$0x1] %vm235_vm3, %v7546_v2  ;;  %v7664_v6 = vld [vmem:[%s7655_s28 + $0x10] sm:$0xff]  ;;  %v7671_v9 = vld [vmem:[%s7655_s28 + $0x18] sm:$0xff] }
  0x15   : > { %244 = vst.msk [vmem:[#allocation2 + $0xc0] sm:$0x1] %vm235_vm3, %v7546_v2  ;;  %245 = vst.msk [vmem:[#allocation2 + $0xd8] sm:$0x1] %vm235_vm3, %v7546_v2  ;;  %v386_v7 = vld [vmem:[#allocation2 + $0x1] sm:$0xff]  ;;  %v7684_v13 = vld [vmem:[%s7655_s28 + $0x30] sm:$0xff] }
  0x16   : > { %246 = vst.msk [vmem:[#allocation2 + $0xf0] sm:$0x1] %vm235_vm3, %v7546_v2  ;;  %247 = vst.msk [vmem:[#allocation2 + $0x108] sm:$0x1] %vm235_vm3, %v7546_v2  ;;  %v387_v8 = vld [vmem:[#allocation2 + $0x9] sm:$0xff]  ;;  %v7678_v11 = vld [vmem:[%s7655_s28 + $0x20] sm:$0xff] }
  0x17   : > { %248 = vst.msk [vmem:[#allocation2 + $0x120] sm:$0x1] %vm235_vm3, %v7546_v2  ;;  %249 = vst.msk [vmem:[#allocation2 + $0x138] sm:$0x1] %vm235_vm3, %v7546_v2  ;;  %v418_v10 = vpack.c.bf16 %v387_v8, %v386_v7  ;;  %v7681_v12 = vld [vmem:[%s7655_s28 + $0x28] sm:$0xff]  ;;  %v7691_v14 = vld [vmem:[%s7655_s28 + $0x38] sm:$0xff] }
  0x18   : > { %250 = vst.msk [vmem:[#allocation2 + $0x150] sm:$0x1] %vm235_vm3, %v7546_v2  ;;  %251 = vst.msk [vmem:[#allocation2 + $0x168] sm:$0x1] %vm235_vm3, %v7546_v2  ;;  %v7696_v15 = vld [vmem:[%s7655_s28 + $0x40] sm:$0xff]  ;;  %v7699_v16 = vld [vmem:[%s7655_s28 + $0x48] sm:$0xff] }
  0x19   : > { %252 = vst.msk [vmem:[#allocation2 + $0x180] sm:$0x1] %vm235_vm3, %v7546_v2  ;;  %253 = vst.msk [vmem:[#allocation2 + $0x198] sm:$0x1] %vm235_vm3, %v7546_v2  ;;  %6389 = vmatprep.mubr.msk.bf16.mxu0 %vm226_vm1, %v418_v10  ;;  %v7709_v17 = vld [vmem:[%s7655_s28 + $0x50] sm:$0xff]  ;;  %v7712_v18 = vld [vmem:[%s7655_s28 + $0x58] sm:$0xff] }
  0x1a   : > { %254 = vst.msk [vmem:[#allocation2 + $0x11] sm:$0x1] %vm235_vm3, %v7546_v2  ;;  %255 = vst.msk [vmem:[#allocation2 + $0x29] sm:$0x1] %vm235_vm3, %v7546_v2  ;;  %v7715_v19 = vld [vmem:[%s7655_s28 + $0x60] sm:$0xff]  ;;  %v7722_v20 = vld [vmem:[%s7655_s28 + $0x68] sm:$0xff] }
  0x1b   : > { %256 = vst.msk [vmem:[#allocation2 + $0x41] sm:$0x1] %vm235_vm3, %v7546_v2  ;;  %257 = vst.msk [vmem:[#allocation2 + $0x59] sm:$0x1] %vm235_vm3, %v7546_v2  ;;  %v7727_v21 = vld [vmem:[%s7655_s28 + $0x70] sm:$0xff]  ;;  %v7730_v22 = vld [vmem:[%s7655_s28 + $0x78] sm:$0xff] }
  0x1c   : > { %258 = vst.msk [vmem:[#allocation2 + $0x71] sm:$0x1] %vm235_vm3, %v7546_v2  ;;  %259 = vst.msk [vmem:[#allocation2 + $0x89] sm:$0x1] %vm235_vm3, %v7546_v2  ;;  %v7739_v23 = vld [vmem:[%s7655_s28 + $0x80] sm:$0xff]  ;;  %v7742_v24 = vld [vmem:[%s7655_s28 + $0x88] sm:$0xff] }
  0x1d   : > { %260 = vst.msk [vmem:[#allocation2 + $0xa1] sm:$0x1] %vm235_vm3, %v7546_v2  ;;  %261 = vst.msk [vmem:[#allocation2 + $0xb9] sm:$0x1] %vm235_vm3, %v7546_v2  ;;  %v7745_v25 = vld [vmem:[%s7655_s28 + $0x90] sm:$0xff]  ;;  %v7752_v26 = vld [vmem:[%s7655_s28 + $0x98] sm:$0xff] }
  0x1e   : > { %262 = vst.msk [vmem:[#allocation2 + $0xd1] sm:$0x1] %vm235_vm3, %v7546_v2  ;;  %263 = vst.msk [vmem:[#allocation2 + $0xe9] sm:$0x1] %vm235_vm3, %v7546_v2  ;;  %v7757_v27 = vld [vmem:[%s7655_s28 + $0xa0] sm:$0xff]  ;;  %v7760_v28 = vld [vmem:[%s7655_s28 + $0xa8] sm:$0xff] }
  0x1f   : > { %264 = vst.msk [vmem:[#allocation2 + $0x101] sm:$0x1] %vm235_vm3, %v7546_v2  ;;  %265 = vst.msk [vmem:[#allocation2 + $0x119] sm:$0x1] %vm235_vm3, %v7546_v2  ;;  %v7773_v35 = vld [vmem:[%s7655_s28 + $0xb0] sm:$0xff]  ;;  %v7776_v36 = vld [vmem:[%s7655_s28 + $0xb8] sm:$0xff] }
  0x20   : > { %266 = vst.msk [vmem:[#allocation2 + $0x131] sm:$0x1] %vm235_vm3, %v7546_v2  ;;  %267 = vst.msk [vmem:[#allocation2 + $0x149] sm:$0x1] %vm235_vm3, %v7546_v2  ;;  %v7800_v45 = vld [vmem:[%s7655_s28 + $0xc0] sm:$0xff]  ;;  %v7803_v46 = vld [vmem:[%s7655_s28 + $0xc8] sm:$0xff] }
  0x21   : > { %268 = vst.msk [vmem:[#allocation2 + $0x161] sm:$0x1] %vm235_vm3, %v7546_v2  ;;  %269 = vst.msk [vmem:[#allocation2 + $0x179] sm:$0x1] %vm235_vm3, %v7546_v2  ;;  %v7806_v47 = vld [vmem:[%s7655_s28 + $0xd0] sm:$0xff]  ;;  %v7813_v48 = vld [vmem:[%s7655_s28 + $0xd8] sm:$0xff] }
  0x22   : > { %270 = vst.msk [vmem:[#allocation2 + $0x191] sm:$0x1] %vm235_vm3, %v7546_v2  ;;  %271 = vst.msk [vmem:[#allocation2 + $0x1a9] sm:$0x1] %vm235_vm3, %v7546_v2  ;;  %v7820_v49 = vld [vmem:[%s7655_s28 + $0xe0] sm:$0xff]  ;;  %v7823_v50 = vld [vmem:[%s7655_s28 + $0xe8] sm:$0xff] }
  0x23   : > { %305 = vst.msk [vmem:[#allocation2 + $0x19] sm:$0xff] %vm226_vm1, %v7658_v4  ;;  %306 = vst.msk [vmem:[#allocation2 + $0x21] sm:$0xff] %vm226_vm1, %v7661_v5 }
  0x24   : > { %307 = vst.msk [vmem:[#allocation2 + $0x31] sm:$0xff] %vm226_vm1, %v7664_v6  ;;  %308 = vst.msk [vmem:[#allocation2 + $0x39] sm:$0xff] %vm226_vm1, %v7671_v9 }
  0x25   : > { %309 = vst.msk [vmem:[#allocation2 + $0x49] sm:$0xff] %vm226_vm1, %v7678_v11  ;;  %310 = vst.msk [vmem:[#allocation2 + $0x51] sm:$0xff] %vm226_vm1, %v7681_v12 }
  0x26   : > { %311 = vst.msk [vmem:[#allocation2 + $0x61] sm:$0xff] %vm226_vm1, %v7684_v13  ;;  %8893 = vst [vmem:[#allocation3_spill] sm:$0xff] %v7699_v16 }
  0x27   : > { %312 = vst.msk [vmem:[#allocation2 + $0x69] sm:$0xff] %vm226_vm1, %v7691_v14  ;;  %313 = vst.msk [vmem:[#allocation2 + $0x79] sm:$0xff] %vm226_vm1, %v7696_v15 }
  0x28   : > { %314 = vst.msk [vmem:[#allocation2 + $0x81] sm:$0xff] %vm226_vm1, %v7699_v16  ;;  %8894 = vst [vmem:[#allocation4_spill] sm:$0xff] %v7715_v19 }
  0x29   : > { %315 = vst.msk [vmem:[#allocation2 + $0x91] sm:$0xff] %vm226_vm1, %v7709_v17  ;;  %316 = vst.msk [vmem:[#allocation2 + $0x99] sm:$0xff] %vm226_vm1, %v7712_v18 }
  0x2a   : > { %8895 = vst [vmem:[#allocation5_spill] sm:$0xff] %v7722_v20  ;;  %317 = vst.msk [vmem:[#allocation2 + $0xa9] sm:$0xff] %vm226_vm1, %v7715_v19  ;;  %v388_v29 = vld [vmem:[#allocation2 + $0x19] sm:$0xff]  ;;  %v389_v30 = vld [vmem:[#allocation2 + $0x21] sm:$0xff] }
  0x2b   : > { %8896 = vst [vmem:[#allocation6_spill] sm:$0xff] %v7727_v21  ;;  %8897 = vst [vmem:[#allocation7_spill] sm:$0xff] %v7730_v22  ;;  %v390_v31 = vld [vmem:[#allocation2 + $0x31] sm:$0xff]  ;;  %v7768_v32 = vpack.c.bf16 %v389_v30, %v388_v29  ;;  %v391_v34 = vld [vmem:[#allocation2 + $0x39] sm:$0xff] }
  0x2c   : > { %318 = vst.msk [vmem:[#allocation2 + $0xb1] sm:$0xff] %vm226_vm1, %v7722_v20  ;;  %319 = vst.msk [vmem:[#allocation2 + $0xc1] sm:$0xff] %vm226_vm1, %v7727_v21  ;;  %v7778_v37 = vpack.c.bf16 %v391_v34, %v390_v31  ;;  %v392_v39 = vld [vmem:[#allocation2 + $0x49] sm:$0xff]  ;;  %v393_v40 = vld [vmem:[#allocation2 + $0x51] sm:$0xff] }
  0x2d   : > { %320 = vst.msk [vmem:[#allocation2 + $0xc9] sm:$0xff] %vm226_vm1, %v7730_v22  ;;  %8898 = vst [vmem:[#allocation8_spill] sm:$0xff] %v7739_v23  ;;  %6390 = vmatmul.mubr.msk.bf16.vlgmr.msra.gmra.mrb[0].mxu0 %vm226_vm1, %v7768_v32  ;;  %v394_v41 = vld [vmem:[#allocation2 + $0x61] sm:$0xff]  ;;  %v7795_v43 = vpack.c.bf16 %v393_v40, %v392_v39 }
  0x2e   : > { %8899 = vst [vmem:[#allocation9_spill] sm:$0xff] %v7742_v24  ;;  %8900 = vst [vmem:[#allocation10_spill] sm:$0xff] %v7745_v25  ;;  %6422 = vmatpush3.bf16.msra.mxu0 %v698_v33  ;;  %6393 = vmatprep.mubr.msk.bf16.mxu0 %vm226_vm1, %v7778_v37  ;;  %v395_v42 = vld [vmem:[#allocation2 + $0x69] sm:$0xff]  ;;  %v396_v51 = vld [vmem:[#allocation2 + $0x79] sm:$0xff] }
  0x2f   : > { %321 = vst.msk [vmem:[#allocation2 + $0xd9] sm:$0xff] %vm226_vm1, %v7739_v23  ;;  %322 = vst.msk [vmem:[#allocation2 + $0xe1] sm:$0xff] %vm226_vm1, %v7742_v24  ;;  %7513 = vmatprep.subr.msk.bf16.mxu0 %vm484_vm0, %v7787_v38  ;;  %v7797_v44 = vpack.c.bf16 %v395_v42, %v394_v41  ;;  %v397_v52 = vld [vmem:[#allocation2 + $0x81] sm:$0xff] }
  0x30   : > { %8901 = vst [vmem:[#allocation11_spill] sm:$0xff] %v7752_v26  ;;  %323 = vst.msk [vmem:[#allocation2 + $0xf1] sm:$0xff] %vm226_vm1, %v7745_v25  ;;  %v398_v53 = vld [vmem:[#allocation2 + $0x91] sm:$0xff]  ;;  %v399_v54 = vld [vmem:[#allocation2 + $0x99] sm:$0xff]  ;;  %v7833_v55 = vpack.c.bf16 %v397_v52, %v396_v51 }
  0x31   : > { %8902 = vst [vmem:[#allocation12_spill] sm:$0xff] %v7757_v27  ;;  %8903 = vst [vmem:[#allocation13_spill] sm:$0xff] %v7760_v28  ;;  %v7835_v56 = vpack.c.bf16 %v399_v54, %v398_v53  ;;  %v400_v57 = vld [vmem:[#allocation2 + $0xa9] sm:$0xff]  ;;  %v337_v54 = vld [vmem:[#allocation2] sm:$0xff] }
  0x32   : > { %324 = vst.msk [vmem:[#allocation2 + $0xf9] sm:$0xff] %vm226_vm1, %v7752_v26  ;;  %325 = vst.msk [vmem:[#allocation2 + $0x109] sm:$0xff] %vm226_vm1, %v7757_v27 }
  0x33   : > { %326 = vst.msk [vmem:[#allocation2 + $0x111] sm:$0xff] %vm226_vm1, %v7760_v28  ;;  %8904 = vst [vmem:[#allocation14_spill] sm:$0xff] %v7773_v35  ;;  %v401_v58 = vld [vmem:[#allocation2 + $0xb1] sm:$0xff]  ;;  %v402_v59 = vld [vmem:[#allocation2 + $0xc1] sm:$0xff] }
  0x34   : > { %8905 = vst [vmem:[#allocation15_spill] sm:$0xff] %v7776_v36  ;;  %327 = vst.msk [vmem:[#allocation2 + $0x121] sm:$0xff] %vm226_vm1, %v7773_v35  ;;  %v403_v60 = vld [vmem:[#allocation2 + $0xc9] sm:$0xff]  ;;  %v7841_v61 = vpack.c.bf16 %v401_v58, %v400_v57 }
  0x35   : > { %328 = vst.msk [vmem:[#allocation2 + $0x129] sm:$0xff] %vm226_vm1, %v7776_v36  ;;  %8906 = vst [vmem:[#allocation16_spill] sm:$0xff] %v7800_v45  ;;  %6394 = vmatmul.mubr.msk.bf16.gmra.mrb[4].mxu0 %vm226_vm1, %v7795_v43  ;;  %v7843_v62 = vpack.c.bf16 %v403_v60, %v402_v59  ;;  %v338_v57 = vld [vmem:[#allocation2 + $0x8] sm:$0xff]  ;;  %v339_v60 = vld [vmem:[#allocation2 + $0x18] sm:$0xff] }
  0x36   : > { %8907 = vst [vmem:[#allocation17_spill] sm:$0xff] %v7803_v46  ;;  %8908 = vst [vmem:[#allocation18_spill] sm:$0xff] %v7806_v47  ;;  %6397 = vmatprep.mubr.msk.bf16.mxu0 %vm226_vm1, %v7797_v44  ;;  %v404_v63 = vld [vmem:[#allocation2 + $0xd9] sm:$0xff]  ;;  %v405_v0 = vld [vmem:[#allocation2 + $0xe1] sm:$0xff]  ;;  %v369_v59 = vpack.c.bf16 %v338_v57, %v337_v54 }
  0x37   : > { %329 = vst.msk [vmem:[#allocation2 + $0x139] sm:$0xff] %vm226_vm1, %v7800_v45  ;;  %330 = vst.msk [vmem:[#allocation2 + $0x141] sm:$0xff] %vm226_vm1, %v7803_v46  ;;  %v406_v1 = vld [vmem:[#allocation2 + $0xf1] sm:$0xff]  ;;  %v7849_v3 = vpack.c.bf16 %v405_v0, %v404_v63  ;;  %v340_v63 = vld [vmem:[#allocation2 + $0x20] sm:$0xff] }
  0x38   : > { %8909 = vst [vmem:[#allocation19_spill] sm:$0xff] %v7813_v48  ;;  %331 = vst.msk [vmem:[#allocation2 + $0x151] sm:$0xff] %vm226_vm1, %v7806_v47  ;;  %v341_v0 = vld [vmem:[#allocation2 + $0x30] sm:$0xff]  ;;  %v350_v57 = vld [vmem:[#allocation2 + $0x98] sm:$0xff] }
  0x39   : > { %332 = vst.msk [vmem:[#allocation2 + $0x159] sm:$0xff] %vm226_vm1, %v7813_v48  ;;  %8910 = vst [vmem:[#allocation20_spill] sm:$0xff] %v7820_v49  ;;  %v407_v2 = vld [vmem:[#allocation2 + $0xf9] sm:$0xff]  ;;  %v408_v8 = vld [vmem:[#allocation2 + $0x109] sm:$0xff] }
  0x3a   : > { %8911 = vst [vmem:[#allocation21_spill] sm:$0xff] %v7823_v50  ;;  %333 = vst.msk [vmem:[#allocation2 + $0x169] sm:$0xff] %vm226_vm1, %v7820_v49  ;;  %v7851_v7 = vpack.c.bf16 %v407_v2, %v406_v1  ;;  %v409_v10 = vld [vmem:[#allocation2 + $0x111] sm:$0xff]  ;;  %v7878_v2 = vpack.c.bf16 %v340_v63, %v339_v60  ;;  %v351_v63 = vld [vmem:[#allocation2 + $0xa8] sm:$0xff] }
  0x3b   : > { %334 = vst.msk [vmem:[#allocation2 + $0x171] sm:$0xff] %vm226_vm1, %v7823_v50  ;;  %v410_v29 = vld [vmem:[#allocation2 + $0x121] sm:$0xff]  ;;  %v7857_v31 = vpack.c.bf16 %v409_v10, %v408_v8  ;;  %v342_v1 = vld [vmem:[#allocation2 + $0x38] sm:$0xff]  ;;  %v960_v10 = vsel %vm484_vm0, %v7787_v38, 0  ;;  %v349_v54 = vld [vmem:[#allocation2 + $0x90] sm:$0xff] }
  0x3c   : > { %v411_v30 = vld [vmem:[#allocation2 + $0x129] sm:$0xff]  ;;  %v7880_v8 = vpack.c.bf16 %v342_v1, %v341_v0  ;;  %v7905_v60 = vpack.c.bf16 %v350_v57, %v349_v54  ;;  %v353_v1 = vld [vmem:[#allocation2 + $0xc0] sm:$0xff] }
  0x3d   : > { %6398 = vmatmul.mubr.msk.bf16.gmra.mrb[8].mxu0 %vm226_vm1, %v7833_v55  ;;  %v7859_v33 = vpack.c.bf16 %v411_v30, %v410_v29  ;;  %v7887_v29 = vld [vmem:[%s8866_s1 + $0x6] sm:$0x3]  ;;  %v343_v30 = vld [vmem:[#allocation2 + $0x48] sm:$0xff]  ;;  %v352_v0 = vld [vmem:[#allocation2 + $0xb0] sm:$0xff] }
  0x3e   : > { %6401 = vmatprep.mubr.msk.bf16.mxu0 %vm226_vm1, %v7835_v56  ;;  %v412_v34 = vld [vmem:[#allocation2 + $0x139] sm:$0xff]  ;;  %v413_v39 = vld [vmem:[#allocation2 + $0x141] sm:$0xff]  ;;  %v7940_v45 = vld [vmem:[%s7655_s28 + $0xf0] sm:$0xff]  ;;  %v1254_v27 = vsel %vm484_vm0, %v7887_v29, 0 }
  0x3f   : > { %v414_v40 = vld [vmem:[#allocation2 + $0x151] sm:$0xff]  ;;  %v7865_v42 = vpack.c.bf16 %v413_v39, %v412_v34  ;;  %v345_v39 = vld [vmem:[#allocation2 + $0x60] sm:$0xff]  ;;  %8912 = vst [vmem:[#allocation22_spill] sm:$0xff] %v7940_v45  ;;  %335 = vst.msk [vmem:[#allocation2 + $0x181] sm:$0xff] %vm226_vm1, %v7940_v45 }
  0x40   : > { %v415_v41 = vld [vmem:[#allocation2 + $0x159] sm:$0xff]  ;;  %v344_v34 = vld [vmem:[#allocation2 + $0x50] sm:$0xff] }
  0x41   : > { %v7867_v51 = vpack.c.bf16 %v415_v41, %v414_v40  ;;  %v416_v52 = vld [vmem:[#allocation2 + $0x169] sm:$0xff]  ;;  %v7895_v38 = vpack.c.bf16 %v344_v34, %v343_v30  ;;  %v7911_v30 = vpack.c.bf16 %v352_v0, %v351_v63  ;;  %v865_v45 = vld [vmem:[#allocation2 + $0x32] sm:$0xff]  ;;  %v866_v47 = vld [vmem:[#allocation2 + $0x3a] sm:$0xff] }
  0x42   : > { %v417_v53 = vld [vmem:[#allocation2 + $0x171] sm:$0xff]  ;;  %v346_v40 = vld [vmem:[#allocation2 + $0x68] sm:$0xff]  ;;  %v7960_v36 = vpack.c.bf16 %v866_v47, %v865_v45 }
  0x43   : > { %v7873_v58 = vpack.c.bf16 %v417_v53, %v416_v52  ;;  %v7897_v41 = vpack.c.bf16 %v346_v40, %v345_v39  ;;  %v347_v52 = vld [vmem:[#allocation2 + $0x78] sm:$0xff]  ;;  %v348_v53 = vld [vmem:[#allocation2 + $0x80] sm:$0xff]  ;;  %v359_v63 = vld [vmem:[#allocation2 + $0x108] sm:$0xff] }
  0x44   : > { %v355_v39 = vld [vmem:[#allocation2 + $0xd8] sm:$0xff]  ;;  %v356_v40 = vld [vmem:[#allocation2 + $0xe0] sm:$0xff]  ;;  %v360_v0 = vld [vmem:[#allocation2 + $0x110] sm:$0xff] }
  0x45   : > { %6402 = vmatmul.mubr.msk.bf16.gmra.mrb[12].mxu0 %vm226_vm1, %v7841_v61  ;;  %v7919_v54 = vpack.c.bf16 %v356_v40, %v355_v39  ;;  %v7927_v50 = vpack.c.bf16 %v360_v0, %v359_v63  ;;  %v363_v39 = vld [vmem:[#allocation2 + $0x138] sm:$0xff]  ;;  %v364_v40 = vld [vmem:[#allocation2 + $0x140] sm:$0xff]  ;;  %v367_v0 = vld [vmem:[#allocation2 + $0x168] sm:$0xff] }
  0x46   : > { %6405 = vmatprep.mubr.msk.bf16.mxu0 %vm226_vm1, %v7843_v62  ;;  %v7935_v46 = vpack.c.bf16 %v364_v40, %v363_v39  ;;  %v7943_v63 = vld [vmem:[%s7655_s28 + $0xf8] sm:$0xff]  ;;  %v862_v39 = vld [vmem:[#allocation2 + $0xa] sm:$0xff] }
  0x47   : > { %8913 = vst [vmem:[#allocation23_spill] sm:$0xff] %v7943_v63  ;;  %336 = vst.msk [vmem:[#allocation2 + $0x189] sm:$0xff] %vm226_vm1, %v7943_v63  ;;  %v864_v63 = vld [vmem:[#allocation2 + $0x22] sm:$0xff] }
  0x4d   : > { %6406 = vmatmul.mubr.msk.bf16.gmra.mrb[16].mxu0 %vm226_vm1, %v7849_v3 }
  0x4e   : > { %6409 = vmatprep.mubr.msk.bf16.mxu0 %vm226_vm1, %v7851_v7 }
  0x55   : > { %6410 = vmatmul.mubr.msk.bf16.gmra.mrb[20].mxu0 %vm226_vm1, %v7857_v31 }
  0x56   : > { %6413 = vmatprep.mubr.msk.bf16.mxu0 %vm226_vm1, %v7859_v33 }
  0x5d   : > { %6414 = vmatmul.mubr.msk.bf16.gmra.mrb[24].mxu0 %vm226_vm1, %v7865_v42 }
  0x5e   : > { %6417 = vmatprep.mubr.msk.bf16.mxu0 %vm226_vm1, %v7867_v51 }
  0x65   : > { %6418 = vmatmul.mubr.msk.bf16.gmra.mrb[28].mxu0 %vm226_vm1, %v7873_v58 }
  0x66   : > { %6423 = vmatprep.mubr.msk.bf16.mxu0 %vm226_vm1, %v369_v59  ;;  %v7903_v59 = vpack.c.bf16 %v348_v53, %v347_v52  ;;  %v357_v52 = vld [vmem:[#allocation2 + $0xf0] sm:$0xff]  ;;  %v358_v53 = vld [vmem:[#allocation2 + $0xf8] sm:$0xff] }
  0x67   : > { %v7921_v57 = vpack.c.bf16 %v358_v53, %v357_v52  ;;  %v365_v52 = vld [vmem:[#allocation2 + $0x150] sm:$0xff]  ;;  %v366_v53 = vld [vmem:[#allocation2 + $0x158] sm:$0xff] }
  0x68   : > { %v7937_v48 = vpack.c.bf16 %v366_v53, %v365_v52  ;;  %v863_v53 = vld [vmem:[#allocation2 + $0x1a] sm:$0xff] }
  0x69   : > { %v7958_v28 = vpack.c.bf16 %v864_v63, %v863_v53  ;;  %v869_v63 = vld [vmem:[#allocation2 + $0x62] sm:$0xff]  ;;  %v874_v53 = vld [vmem:[#allocation2 + $0x9a] sm:$0xff] }
  0x6d   : > { %6424 = vmatmul.mubr.msk.bf16.vlgmr.msra.gmra.mrb[0].mxu0 %vm226_vm1, %v7878_v2 }
  0x6e   : > { %6456 = vmatpush3.bf16.msra.mxu0 %v960_v10  ;;  %6427 = vmatprep.mubr.msk.bf16.mxu0 %vm226_vm1, %v7880_v8  ;;  %v354_v10 = vld [vmem:[#allocation2 + $0xc8] sm:$0xff] }
  0x6f   : > { %7514 = vmatprep.subr.msk.bf16.mxu0 %vm484_vm0, %v7887_v29  ;;  %v7913_v34 = vpack.c.bf16 %v354_v10, %v353_v1  ;;  %v361_v1 = vld [vmem:[#allocation2 + $0x120] sm:$0xff]  ;;  %v362_v10 = vld [vmem:[#allocation2 + $0x128] sm:$0xff] }
  0x70   : > { %v7929_v49 = vpack.c.bf16 %v362_v10, %v361_v1  ;;  %v368_v1 = vld [vmem:[#allocation2 + $0x170] sm:$0xff]  ;;  %v861_v10 = vld [vmem:[#allocation2 + $0x2] sm:$0xff] }
  0x71   : > { %v7953_v40 = vpack.c.bf16 %v368_v1, %v367_v0  ;;  %v893_v52 = vpack.c.bf16 %v862_v39, %v861_v10  ;;  %v5838_v0 = vld [vmem:[%s8866_s1 + $0x8] sm:$0x3]  ;;  %v867_v1 = vld [vmem:[#allocation2 + $0x4a] sm:$0xff]  ;;  %v868_v10 = vld [vmem:[#allocation2 + $0x52] sm:$0xff] }
  0x72   : > { %v870_v39 = vld [vmem:[#allocation2 + $0x6a] sm:$0xff]  ;;  %v7972_v45 = vpack.c.bf16 %v868_v10, %v867_v1  ;;  %v872_v29 = vld [vmem:[#allocation2 + $0x82] sm:$0xff]  ;;  %v876_v10 = vld [vmem:[#allocation2 + $0xb2] sm:$0xff] }
  0x73   : > { %v7974_v47 = vpack.c.bf16 %v870_v39, %v869_v63  ;;  %v875_v1 = vld [vmem:[#allocation2 + $0xaa] sm:$0xff]  ;;  %v877_v63 = vld [vmem:[#allocation2 + $0xc2] sm:$0xff] }
  0x74   : > { %v878_v39 = vld [vmem:[#allocation2 + $0xca] sm:$0xff]  ;;  %v7988_v26 = vpack.c.bf16 %v876_v10, %v875_v1  ;;  %v884_v10 = vld [vmem:[#allocation2 + $0x112] sm:$0xff] }
  0x75   : > { %6428 = vmatmul.mubr.msk.bf16.gmra.mrb[4].mxu0 %vm226_vm1, %v7895_v38  ;;  %v7990_v23 = vpack.c.bf16 %v878_v39, %v877_v63  ;;  %v883_v1 = vld [vmem:[#allocation2 + $0x10a] sm:$0xff]  ;;  %v885_v63 = vld [vmem:[#allocation2 + $0x122] sm:$0xff] }
  0x76   : > { %6431 = vmatprep.mubr.msk.bf16.mxu0 %vm226_vm1, %v7897_v41  ;;  %v886_v39 = vld [vmem:[#allocation2 + $0x12a] sm:$0xff]  ;;  %v8004_v22 = vpack.c.bf16 %v884_v10, %v883_v1  ;;  %v892_v10 = vld [vmem:[#allocation2 + $0x172] sm:$0xff] }
  0x77   : > { %v8006_v19 = vpack.c.bf16 %v886_v39, %v885_v63  ;;  %v891_v1 = vld [vmem:[#allocation2 + $0x16a] sm:$0xff]  ;;  %v1548_v39 = vsel %vm484_vm0, %v5838_v0, 0 }
  0x78   : > { %v8020_v63 = vpack.c.bf16 %v892_v10, %v891_v1  ;;  %v2342_v1 = vld [vmem:[#allocation2 + $0xa9] sm:$0xff]  ;;  %v2343_v10 = vld [vmem:[#allocation2 + $0xb1] sm:$0xff] }
  0x7d   : > { %6432 = vmatmul.mubr.msk.bf16.gmra.mrb[8].mxu0 %vm226_vm1, %v7903_v59 }
  0x7e   : > { %6435 = vmatprep.mubr.msk.bf16.mxu0 %vm226_vm1, %v7905_v60 }
  0x85   : > { %6436 = vmatmul.mubr.msk.bf16.gmra.mrb[12].mxu0 %vm226_vm1, %v7911_v30 }
  0x86   : > { %6439 = vmatprep.mubr.msk.bf16.mxu0 %vm226_vm1, %v7913_v34 }
  0x8d   : > { %6440 = vmatmul.mubr.msk.bf16.gmra.mrb[16].mxu0 %vm226_vm1, %v7919_v54 }
  0x8e   : > { %6443 = vmatprep.mubr.msk.bf16.mxu0 %vm226_vm1, %v7921_v57 }
  0x95   : > { %6444 = vmatmul.mubr.msk.bf16.gmra.mrb[20].mxu0 %vm226_vm1, %v7927_v50 }
  0x96   : > { %6447 = vmatprep.mubr.msk.bf16.mxu0 %vm226_vm1, %v7929_v49 }
  0x9d   : > { %6448 = vmatmul.mubr.msk.bf16.gmra.mrb[24].mxu0 %vm226_vm1, %v7935_v46 }
  0x9e   : > { %6451 = vmatprep.mubr.msk.bf16.mxu0 %vm226_vm1, %v7937_v48 }
  0xa5   : > { %6452 = vmatmul.mubr.msk.bf16.gmra.mrb[28].mxu0 %vm226_vm1, %v7953_v40 }
  0xa6   : > { %6457 = vmatprep.mubr.msk.bf16.mxu0 %vm226_vm1, %v893_v52  ;;  %v873_v52 = vld [vmem:[#allocation2 + $0x92] sm:$0xff] }
  0xa7   : > { %v7982_v24 = vpack.c.bf16 %v874_v53, %v873_v52  ;;  %v881_v52 = vld [vmem:[#allocation2 + $0xf2] sm:$0xff]  ;;  %v882_v53 = vld [vmem:[#allocation2 + $0xfa] sm:$0xff] }
  0xa8   : > { %v7998_v20 = vpack.c.bf16 %v882_v53, %v881_v52  ;;  %v889_v52 = vld [vmem:[#allocation2 + $0x152] sm:$0xff]  ;;  %v890_v53 = vld [vmem:[#allocation2 + $0x15a] sm:$0xff] }
  0xa9   : > { %v8014_v16 = vpack.c.bf16 %v890_v53, %v889_v52  ;;  %v5872_v53 = vld [vmem:[%s8866_s1 + $0xc] sm:$0x3] }
  0xad   : > { %6458 = vmatmul.mubr.msk.bf16.vlgmr.msra.gmra.mrb[0].mxu0 %vm226_vm1, %v7958_v28 }
  0xae   : > { %6490 = vmatpush3.bf16.msra.mxu0 %v1254_v27  ;;  %6461 = vmatprep.mubr.msk.bf16.mxu0 %vm226_vm1, %v7960_v36  ;;  %v871_v27 = vld [vmem:[#allocation2 + $0x7a] sm:$0xff] }
  0xaf   : > { %7515 = vmatprep.subr.msk.bf16.mxu0 %vm484_vm0, %v5838_v0  ;;  %v7980_v35 = vpack.c.bf16 %v872_v29, %v871_v27  ;;  %v879_v27 = vld [vmem:[#allocation2 + $0xda] sm:$0xff]  ;;  %v880_v29 = vld [vmem:[#allocation2 + $0xe2] sm:$0xff] }
  0xb0   : > { %v7996_v25 = vpack.c.bf16 %v880_v29, %v879_v27  ;;  %v887_v27 = vld [vmem:[#allocation2 + $0x13a] sm:$0xff]  ;;  %v888_v29 = vld [vmem:[#allocation2 + $0x142] sm:$0xff] }
  0xb1   : > { %v8012_v21 = vpack.c.bf16 %v888_v29, %v887_v27  ;;  %v5855_v27 = vld [vmem:[%s8866_s1 + $0xa] sm:$0x3] }
  0xb2   : > { %v1186_v0 = vld [vmem:[#allocation2 + $0x188] sm:$0xff]  ;;  %v1842_v52 = vsel %vm484_vm0, %v5855_v27, 0 }
  0xb5   : > { %6462 = vmatmul.mubr.msk.bf16.gmra.mrb[4].mxu0 %vm226_vm1, %v7972_v45 }
  0xb6   : > { %6465 = vmatprep.mubr.msk.bf16.mxu0 %vm226_vm1, %v7974_v47 }
  0xbd   : > { %6466 = vmatmul.mubr.msk.bf16.gmra.mrb[8].mxu0 %vm226_vm1, %v7980_v35 }
  0xbe   : > { %6469 = vmatprep.mubr.msk.bf16.mxu0 %vm226_vm1, %v7982_v24 }
  0xc5   : > { %6470 = vmatmul.mubr.msk.bf16.gmra.mrb[12].mxu0 %vm226_vm1, %v7988_v26 }
  0xc6   : > { %6473 = vmatprep.mubr.msk.bf16.mxu0 %vm226_vm1, %v7990_v23 }
  0xcd   : > { %6474 = vmatmul.mubr.msk.bf16.gmra.mrb[16].mxu0 %vm226_vm1, %v7996_v25 }
  0xce   : > { %6477 = vmatprep.mubr.msk.bf16.mxu0 %vm226_vm1, %v7998_v20 }
  0xd5   : > { %6478 = vmatmul.mubr.msk.bf16.gmra.mrb[20].mxu0 %vm226_vm1, %v8004_v22 }
  0xd6   : > { %6481 = vmatprep.mubr.msk.bf16.mxu0 %vm226_vm1, %v8006_v19 }
  0xdd   : > { %6482 = vmatmul.mubr.msk.bf16.gmra.mrb[24].mxu0 %vm226_vm1, %v8012_v21 }
  0xde   : > { %6485 = vmatprep.mubr.msk.bf16.mxu0 %vm226_vm1, %v8014_v16 }
  0xe5   : > { %6486 = vmatmul.mubr.msk.bf16.gmra.mrb[28].mxu0 %vm226_vm1, %v8020_v63 }
  0xe6   : > { %6491 = vmatprep.mubr.msk.bf16.mxu0 %vm226_vm1, %v7878_v2  ;;  %v1185_v2 = vld [vmem:[#allocation2 + $0x180] sm:$0xff] }
  0xe7   : > { %v8059_v29 = vpack.c.bf16 %v1186_v0, %v1185_v2  ;;  %v2369_v2 = vpack.c.bf16 %v2343_v10, %v2342_v1 }
  0xed   : > { %6492 = vmatmul.mubr.msk.bf16.vlgmr.msra.gmra.mrb[0].mxu0 %vm226_vm1, %v7880_v8 }
  0xee   : > { %6524 = vmatpush3.bf16.msra.mxu0 %v1548_v39  ;;  %6495 = vmatprep.mubr.msk.bf16.mxu0 %vm226_vm1, %v7895_v38  ;;  %v2344_v39 = vld [vmem:[#allocation2 + $0xc1] sm:$0xff] }
  0xef   : > { %7516 = vmatprep.subr.msk.bf16.mxu0 %vm484_vm0, %v5855_v27  ;;  %v2345_v27 = vld [vmem:[#allocation2 + $0xc9] sm:$0xff] }
  0xf0   : > { %v2370_v0 = vpack.c.bf16 %v2345_v27, %v2344_v39 }
  0xf5   : > { %6496 = vmatmul.mubr.msk.bf16.gmra.mrb[4].mxu0 %vm226_vm1, %v7897_v41 }
  0xf6   : > { %6499 = vmatprep.mubr.msk.bf16.mxu0 %vm226_vm1, %v7903_v59 }
  0xfd   : > { %6500 = vmatmul.mubr.msk.bf16.gmra.mrb[8].mxu0 %vm226_vm1, %v7905_v60 }
  0xfe   : > { %6503 = vmatprep.mubr.msk.bf16.mxu0 %vm226_vm1, %v7911_v30 }
 0x105   : > { %6504 = vmatmul.mubr.msk.bf16.gmra.mrb[12].mxu0 %vm226_vm1, %v7913_v34 }
 0x106   : > { %6507 = vmatprep.mubr.msk.bf16.mxu0 %vm226_vm1, %v7919_v54 }
 0x10d   : > { %6508 = vmatmul.mubr.msk.bf16.gmra.mrb[16].mxu0 %vm226_vm1, %v7921_v57 }
 0x10e   : > { %6511 = vmatprep.mubr.msk.bf16.mxu0 %vm226_vm1, %v7927_v50 }
 0x115   : > { %6512 = vmatmul.mubr.msk.bf16.gmra.mrb[20].mxu0 %vm226_vm1, %v7929_v49 }
 0x116   : > { %6515 = vmatprep.mubr.msk.bf16.mxu0 %vm226_vm1, %v7935_v46 }
 0x11d   : > { %6516 = vmatmul.mubr.msk.bf16.gmra.mrb[24].mxu0 %vm226_vm1, %v7937_v48 }
 0x11e   : > { %6519 = vmatprep.mubr.msk.bf16.mxu0 %vm226_vm1, %v7953_v40 }
 0x125   : > { %6520 = vmatmul.mubr.msk.bf16.gmra.mrb[28].mxu0 %vm226_vm1, %v8059_v29 }
 0x126   : > { %6525 = vmatprep.mubr.msk.bf16.mxu0 %vm226_vm1, %v7768_v32  ;;  %v1479_v32 = vld [vmem:[#allocation2 + $0x181] sm:$0xff] }
 0x12d   : > { %6526 = vmatmul.mubr.msk.bf16.vlgmr.msra.gmra.mrb[0].mxu0 %vm226_vm1, %v7778_v37  ;;  %v1480_v37 = vld [vmem:[#allocation2 + $0x189] sm:$0xff] }
 0x12e   : > { %6558 = vmatpush3.bf16.msra.mxu0 %v1842_v52  ;;  %6529 = vmatprep.mubr.msk.bf16.mxu0 %vm226_vm1, %v7795_v43  ;;  %v8098_v43 = vpack.c.bf16 %v1480_v37, %v1479_v32  ;;  %v2347_v52 = vld [vmem:[#allocation2 + $0xe1] sm:$0xff]  ;;  %v2349_v32 = vld [vmem:[#allocation2 + $0xf9] sm:$0xff] }
 0x12f   : > { %7517 = vmatprep.subr.msk.bf16.mxu0 %vm484_vm0, %v5872_v53 }
 0x135   : > { %6530 = vmatmul.mubr.msk.bf16.gmra.mrb[4].mxu0 %vm226_vm1, %v7797_v44  ;;  %v2137_v44 = vsel %vm484_vm0, %v5872_v53, 0  ;;  %v2348_v53 = vld [vmem:[#allocation2 + $0xf1] sm:$0xff] }
 0x136   : > { %6533 = vmatprep.mubr.msk.bf16.mxu0 %vm226_vm1, %v7833_v55  ;;  %v5889_v55 = vld [vmem:[%s8866_s1 + $0xe] sm:$0x3] }
 0x13d   : > { %6534 = vmatmul.mubr.msk.bf16.gmra.mrb[8].mxu0 %vm226_vm1, %v7835_v56  ;;  %v1774_v56 = vld [vmem:[#allocation2 + $0x18a] sm:$0xff] }
 0x13e   : > { %6537 = vmatprep.mubr.msk.bf16.mxu0 %vm226_vm1, %v7841_v61 }
 0x145   : > { %6538 = vmatmul.mubr.msk.bf16.gmra.mrb[12].mxu0 %vm226_vm1, %v7843_v62  ;;  %v2431_v62 = vsel %vm484_vm0, %v5889_v55, 0 }
 0x146   : > { %6541 = vmatprep.mubr.msk.bf16.mxu0 %vm226_vm1, %v7849_v3  ;;  %v5906_v3 = vld [vmem:[%s8866_s1 + $0x10] sm:$0x3] }
 0x14d   : > { %6542 = vmatmul.mubr.msk.bf16.gmra.mrb[16].mxu0 %vm226_vm1, %v7851_v7  ;;  %v2068_v7 = vld [vmem:[#allocation2 + $0x198] sm:$0xff] }
 0x14e   : > { %6545 = vmatprep.mubr.msk.bf16.mxu0 %vm226_vm1, %v7857_v31  ;;  %v2069_v31 = vld [vmem:[#allocation2 + $0x1a0] sm:$0xff] }
 0x155   : > { %6546 = vmatmul.mubr.msk.bf16.gmra.mrb[20].mxu0 %vm226_vm1, %v7859_v33  ;;  %v2332_v33 = vld [vmem:[#allocation2 + $0x31] sm:$0xff] }
 0x156   : > { %6549 = vmatprep.mubr.msk.bf16.mxu0 %vm226_vm1, %v7865_v42  ;;  %v2333_v42 = vld [vmem:[#allocation2 + $0x39] sm:$0xff] }
 0x15d   : > { %6550 = vmatmul.mubr.msk.bf16.gmra.mrb[24].mxu0 %vm226_vm1, %v7867_v51  ;;  %v2364_v51 = vpack.c.bf16 %v2333_v42, %v2332_v33  ;;  %v2355_v33 = vld [vmem:[#allocation2 + $0x141] sm:$0xff]  ;;  %v2356_v42 = vld [vmem:[#allocation2 + $0x151] sm:$0xff] }
 0x15e   : > { %6553 = vmatprep.mubr.msk.bf16.mxu0 %vm226_vm1, %v7873_v58 }
 0x165   : > { %6554 = vmatmul.mubr.msk.bf16.gmra.mrb[28].mxu0 %vm226_vm1, %v8098_v43 }
 0x166   : > { %6559 = vmatprep.mubr.msk.bf16.mxu0 %vm226_vm1, %v7958_v28  ;;  %v1773_v28 = vld [vmem:[#allocation2 + $0x182] sm:$0xff] }
 0x167   : > { %v8137_v61 = vpack.c.bf16 %v1774_v56, %v1773_v28  ;;  %v2351_v28 = vld [vmem:[#allocation2 + $0x111] sm:$0xff]  ;;  %v2352_v56 = vld [vmem:[#allocation2 + $0x121] sm:$0xff] }
 0x16d   : > { %6560 = vmatmul.mubr.msk.bf16.vlgmr.msra.gmra.mrb[0].mxu0 %vm226_vm1, %v7960_v36 }
 0x16e   : > { %6592 = vmatpush3.bf16.msra.mxu0 %v2137_v44  ;;  %6563 = vmatprep.mubr.msk.bf16.mxu0 %vm226_vm1, %v7972_v45  ;;  %v2372_v44 = vpack.c.bf16 %v2349_v32, %v2348_v53 }
 0x16f   : > { %7518 = vmatprep.subr.msk.bf16.mxu0 %vm484_vm0, %v5889_v55  ;;  %v2350_v55 = vld [vmem:[#allocation2 + $0x109] sm:$0xff] }
 0x175   : > { %6564 = vmatmul.mubr.msk.bf16.gmra.mrb[4].mxu0 %vm226_vm1, %v7974_v47 }
 0x176   : > { %6567 = vmatprep.mubr.msk.bf16.mxu0 %vm226_vm1, %v7980_v35 }
 0x17d   : > { %6568 = vmatmul.mubr.msk.bf16.gmra.mrb[8].mxu0 %vm226_vm1, %v7982_v24 }
 0x17e   : > { %6571 = vmatprep.mubr.msk.bf16.mxu0 %vm226_vm1, %v7988_v26 }
 0x185   : > { %6572 = vmatmul.mubr.msk.bf16.gmra.mrb[12].mxu0 %vm226_vm1, %v7990_v23 }
 0x186   : > { %6575 = vmatprep.mubr.msk.bf16.mxu0 %vm226_vm1, %v7996_v25 }
 0x18d   : > { %6576 = vmatmul.mubr.msk.bf16.gmra.mrb[16].mxu0 %vm226_vm1, %v7998_v20 }
 0x18e   : > { %6579 = vmatprep.mubr.msk.bf16.mxu0 %vm226_vm1, %v8004_v22 }
 0x195   : > { %6580 = vmatmul.mubr.msk.bf16.gmra.mrb[20].mxu0 %vm226_vm1, %v8006_v19 }
 0x196   : > { %6583 = vmatprep.mubr.msk.bf16.mxu0 %vm226_vm1, %v8012_v21 }
 0x19d   : > { %6584 = vmatmul.mubr.msk.bf16.gmra.mrb[24].mxu0 %vm226_vm1, %v8014_v16 }
 0x19e   : > { %6587 = vmatprep.mubr.msk.bf16.mxu0 %vm226_vm1, %v8020_v63 }
 0x1a5   : > { %6588 = vmatmul.mubr.msk.bf16.gmra.mrb[28].mxu0 %vm226_vm1, %v8137_v61 }
 0x1a6   : > { %6593 = vmatprep.mubr.msk.bf16.mxu0 %vm226_vm1, %v7880_v8  ;;  %v2336_v8 = vld [vmem:[#allocation2 + $0x61] sm:$0xff] }
 0x1ad   : > { %6594 = vmatmul.mubr.msk.bf16.vlgmr.msra.gmra.mrb[0].mxu0 %vm226_vm1, %v7895_v38 }
 0x1ae   : > { %6626 = vmatpush3.bf16.msra.mxu0 %v2431_v62  ;;  %6597 = vmatprep.mubr.msk.bf16.mxu0 %vm226_vm1, %v7897_v41  ;;  %v2353_v62 = vld [vmem:[#allocation2 + $0x129] sm:$0xff] }
 0x1af   : > { %7519 = vmatprep.subr.msk.bf16.mxu0 %vm484_vm0, %v5906_v3 }
 0x1b5   : > { %6598 = vmatmul.mubr.msk.bf16.gmra.mrb[4].mxu0 %vm226_vm1, %v7903_v59  ;;  %v2725_v59 = vsel %vm484_vm0, %v5906_v3, 0  ;;  %v2373_v3 = vpack.c.bf16 %v2351_v28, %v2350_v55 }
 0x1b6   : > { %6601 = vmatprep.mubr.msk.bf16.mxu0 %vm226_vm1, %v7905_v60  ;;  %v2338_v60 = vld [vmem:[#allocation2 + $0x79] sm:$0xff] }
 0x1bd   : > { %6602 = vmatmul.mubr.msk.bf16.gmra.mrb[8].mxu0 %vm226_vm1, %v7911_v30  ;;  %v2339_v30 = vld [vmem:[#allocation2 + $0x81] sm:$0xff] }
 0x1be   : > { %6605 = vmatprep.mubr.msk.bf16.mxu0 %vm226_vm1, %v7913_v34  ;;  %v2340_v34 = vld [vmem:[#allocation2 + $0x91] sm:$0xff] }
 0x1c5   : > { %6606 = vmatmul.mubr.msk.bf16.gmra.mrb[12].mxu0 %vm226_vm1, %v7919_v54  ;;  %v2341_v54 = vld [vmem:[#allocation2 + $0x99] sm:$0xff] }
 0x1c6   : > { %6609 = vmatprep.mubr.msk.bf16.mxu0 %vm226_vm1, %v7921_v57  ;;  %v2367_v57 = vpack.c.bf16 %v2339_v30, %v2338_v60 }
 0x1cd   : > { %6610 = vmatmul.mubr.msk.bf16.gmra.mrb[16].mxu0 %vm226_vm1, %v7927_v50  ;;  %v2085_v50 = vpack.c.bf16 %v2069_v31, %v2068_v7  ;;  %v2374_v7 = vpack.c.bf16 %v2353_v62, %v2352_v56  ;;  %v2354_v31 = vld [vmem:[#allocation2 + $0x139] sm:$0xff] }
 0x1ce   : > { %6613 = vmatprep.mubr.msk.bf16.mxu0 %vm226_vm1, %v7929_v49  ;;  %v2335_v49 = vld [vmem:[#allocation2 + $0x51] sm:$0xff] }
 0x1d5   : > { %6614 = vmatmul.mubr.msk.bf16.gmra.mrb[20].mxu0 %vm226_vm1, %v7935_v46  ;;  %v2334_v46 = vld [vmem:[#allocation2 + $0x49] sm:$0xff] }
 0x1d6   : > { %6617 = vmatprep.mubr.msk.bf16.mxu0 %vm226_vm1, %v7937_v48  ;;  %v2337_v48 = vld [vmem:[#allocation2 + $0x69] sm:$0xff]  ;;  %v2365_v38 = vpack.c.bf16 %v2335_v49, %v2334_v46  ;;  %v2362_v49 = vld [vmem:[#allocation2 + $0x199] sm:$0xff] }
 0x1d7   : > { %v2366_v41 = vpack.c.bf16 %v2337_v48, %v2336_v8  ;;  %v2363_v8 = vld [vmem:[#allocation2 + $0x1a1] sm:$0xff] }
 0x1d8   : > { %v2379_v48 = vpack.c.bf16 %v2363_v8, %v2362_v49 }
 0x1dd   : > { %6618 = vmatmul.mubr.msk.bf16.gmra.mrb[24].mxu0 %vm226_vm1, %v7953_v40  ;;  %v2368_v40 = vpack.c.bf16 %v2341_v54, %v2340_v34 }
 0x1de   : > { %6621 = vmatprep.mubr.msk.bf16.mxu0 %vm226_vm1, %v8059_v29  ;;  %v2346_v29 = vld [vmem:[#allocation2 + $0xd9] sm:$0xff] }
 0x1df   : > { %v2371_v37 = vpack.c.bf16 %v2347_v52, %v2346_v29 }
 0x1e5   : > { %6622 = vmatmul.mubr.msk.bf16.gmra.mrb[28].mxu0 %vm226_vm1, %v2085_v50  ;;  %v2357_v50 = vld [vmem:[#allocation2 + $0x159] sm:$0xff] }
 0x1e6   : > { %6627 = vmatprep.mubr.msk.bf16.mxu0 %vm226_vm1, %v2364_v51  ;;  %v2375_v51 = vpack.c.bf16 %v2355_v33, %v2354_v31  ;;  %v2376_v46 = vpack.c.bf16 %v2357_v50, %v2356_v42  ;;  %v8267_v31 = vld [vmem:[%s8868_s3 + $0x4] sm:$0x3] }
 0x1ed   : > { %6628 = vmatmul.mubr.msk.bf16.vlgmr.msra.gmra.mrb[0].mxu0 %vm226_vm1, %v2365_v38 }
 0x1ee   : > { %6660 = vmatpush3.bf16.msra.mxu0 %v2725_v59  ;;  %6631 = vmatprep.mubr.msk.bf16.mxu0 %vm226_vm1, %v2366_v41 }
 0x1f5   : > { %6632 = vmatmul.mubr.msk.bf16.gmra.mrb[4].mxu0 %vm226_vm1, %v2367_v57 }
 0x1f6   : > { %6635 = vmatprep.mubr.msk.bf16.mxu0 %vm226_vm1, %v2368_v40 }
 0x1fd   : > { %6636 = vmatmul.mubr.msk.bf16.gmra.mrb[8].mxu0 %vm226_vm1, %v2369_v2 }
 0x1fe   : > { %6639 = vmatprep.mubr.msk.bf16.mxu0 %vm226_vm1, %v2370_v0 }
 0x205   : > { %6640 = vmatmul.mubr.msk.bf16.gmra.mrb[12].mxu0 %vm226_vm1, %v2371_v37 }
 0x206   : > { %6643 = vmatprep.mubr.msk.bf16.mxu0 %vm226_vm1, %v2372_v44 }
 0x20d   : > { %6644 = vmatmul.mubr.msk.bf16.gmra.mrb[16].mxu0 %vm226_vm1, %v2373_v3 }
 0x20e   : > { %6647 = vmatprep.mubr.msk.bf16.mxu0 %vm226_vm1, %v2374_v7 }
 0x215   : > { %6648 = vmatmul.mubr.msk.bf16.gmra.mrb[20].mxu0 %vm226_vm1, %v2375_v51 }
 0x216   : > { %6651 = vmatprep.mubr.msk.bf16.mxu0 %vm226_vm1, %v2376_v46 }
 0x21d   : > { %6652 = vmatmul.mubr.msk.bf16.gmra.mrb[24].mxu0 %vm226_vm1, %v7873_v58 }
 0x21e   : > { %6655 = vmatprep.mubr.msk.bf16.mxu0 %vm226_vm1, %v8098_v43 }
 0x225   : > { %6656 = vmatmul.mubr.msk.bf16.gmra.mrb[28].mxu0 %vm226_vm1, %v2379_v48 }
 0x226   : > { %6661 = vmatprep.mubr.msk.bf16.mxu0 %vm226_vm1, %v7960_v36 }
 0x22d   : > { %6662 = vmatmul.mubr.msk.bf16.vlgmr.msra.gmra.mrb[0].mxu0 %vm226_vm1, %v7972_v45 }
 0x22e   : > { %6665 = vmatprep.mubr.msk.bf16.mxu0 %vm226_vm1, %v7974_v47 }
 0x235   : > { %6666 = vmatmul.mubr.msk.bf16.gmra.mrb[4].mxu0 %vm226_vm1, %v7980_v35  ;;  %v8240_v35 = vld [vmem:[%s8867_s2] ss:$0 sm:$0xff] }
 0x236   : > { %6669 = vmatprep.mubr.msk.bf16.mxu0 %vm226_vm1, %v7982_v24 }
 0x23d   : > { %6670 = vmatmul.mubr.msk.bf16.gmra.mrb[8].mxu0 %vm226_vm1, %v7988_v26  ;;  %v3071_v26 = vld [vmem:[%s8868_s3] sm:$0x3] }
 0x23e   : > { %6673 = vmatprep.mubr.msk.bf16.mxu0 %vm226_vm1, %v7990_v23  ;;  %v2656_v23 = vld [vmem:[#allocation2 + $0x19a] sm:$0xff]  ;;  %v3383_v28 = vsel %vm484_vm0, %v3071_v26, 0 }
 0x245   : > { %6674 = vmatmul.mubr.msk.bf16.gmra.mrb[12].mxu0 %vm226_vm1, %v7996_v25 }
 0x246   : > { %6677 = vmatprep.mubr.msk.bf16.mxu0 %vm226_vm1, %v7998_v20  ;;  %v2657_v20 = vld [vmem:[#allocation2 + $0x1a2] sm:$0xff] }
 0x247   : > { %v2673_v24 = vpack.c.bf16 %v2657_v20, %v2656_v23 }
 0x24d   : > { %6678 = vmatmul.mubr.msk.bf16.gmra.mrb[16].mxu0 %vm226_vm1, %v8004_v22  ;;  %v3073_v22 = vld [vmem:[#allocation2 + $0x9] sm:$0xff] }
 0x24e   : > { %6681 = vmatprep.mubr.msk.bf16.mxu0 %vm226_vm1, %v8006_v19  ;;  %v5924_v19 = vld [vmem:[%s8868_s3 + $0x2] sm:$0x3] }
 0x24f   : > { %7520 = vmatprep.subr.msk.bf16.mxu1 %vm484_vm0, %v5924_v19 }
 0x255   : > { %6682 = vmatmul.mubr.msk.bf16.gmra.mrb[20].mxu0 %vm226_vm1, %v8012_v21  ;;  %v3171_v21 = vsel %vm484_vm0, %v5924_v19, 0 }
 0x256   : > { %6685 = vmatprep.mubr.msk.bf16.mxu0 %vm226_vm1, %v8014_v16  ;;  %v3072_v16 = vld [vmem:[#allocation2 + $0x1] sm:$0xff]  ;;  %6694 = vmatpush3.bf16.msra.mxu1 %v3171_v21 }
 0x257   : > { %v3104_v25 = vpack.c.bf16 %v3073_v22, %v3072_v16  ;;  %7521 = vmatprep.subr.msk.bf16.mxu1 %vm484_vm0, %v3071_v26 }
 0x259   : > { %6695 = vmatprep.mubr.msk.bf16.mxu1 %vm226_vm1, %v3104_v25 }
 0x25d   : > { %6686 = vmatmul.mubr.msk.bf16.gmra.mrb[24].mxu0 %vm226_vm1, %v8020_v63 }
 0x25e   : > { %6689 = vmatprep.mubr.msk.bf16.mxu0 %vm226_vm1, %v8137_v61 }
 0x265   : > { %6690 = vmatmul.mubr.msk.bf16.gmra.mrb[28].mxu0 %vm226_vm1, %v2673_v24 }
 0x300   : > { %v6663_v36 = vpop.f32.mrb[0].mxu0 }
 0x301   : > { %v2929_v58 = vadd.f32 %v6663_v36, %v8240_v35  ;;  %v2761_v45 = vpop.f32.mrb[1].mxu0 }
 0x302   : > { %v2927_v47 = vadd.f32 %v8240_v35, %v2761_v45  ;;  %v6664_v63 = vpop.f32.mrb[2].mxu0 }
 0x303   : > { %v2961_v43 = vmax.f32 %v2929_v58, 0.0  ;;  %v2930_v61 = vadd.f32 %v6664_v63, %v8240_v35  ;;  %v2764_v38 = vpop.f32.mrb[3].mxu0 }
 0x304   : > { %v2959_v41 = vmax.f32 %v2927_v47, 0.0  ;;  %v2928_v59 = vadd.f32 %v8240_v35, %v2764_v38 }
 0x305   : > { %2993 = vst.msk [vmem:[#allocation2 + $0x31] sm:$0xff] %vm226_vm1, %v2961_v43  ;;  %v2962_v60 = vmax.f32 %v2930_v61, 0.0 }
 0x306   : > { %2991 = vst.msk [vmem:[#allocation2 + $0x19] sm:$0xff] %vm226_vm1, %v2959_v41  ;;  %v2960_v30 = vmax.f32 %v2928_v59, 0.0 }
 0x307   : > { %2994 = vst.msk [vmem:[#allocation2 + $0x39] sm:$0xff] %vm226_vm1, %v2962_v60 }
 0x308   : > { %2992 = vst.msk [vmem:[#allocation2 + $0x21] sm:$0xff] %vm226_vm1, %v2960_v30  ;;  %v6667_v34 = vpop.f32.mrb[4].mxu0 }
 0x309   : > { %v2933_v54 = vadd.f32 %v6667_v34, %v8240_v35  ;;  %v2777_v57 = vpop.f32.mrb[5].mxu0 }
 0x30a   : > { %v2931_v40 = vadd.f32 %v8240_v35, %v2777_v57  ;;  %v6668_v1 = vpop.f32.mrb[6].mxu0 }
 0x30b   : > { %v2965_v10 = vmax.f32 %v2933_v54, 0.0  ;;  %v2934_v39 = vadd.f32 %v6668_v1, %v8240_v35  ;;  %v2780_v27 = vpop.f32.mrb[7].mxu0 }
 0x30c   : > { %v2963_v2 = vmax.f32 %v2931_v40, 0.0  ;;  %v2932_v0 = vadd.f32 %v8240_v35, %v2780_v27  ;;  %v3076_v56 = vld [vmem:[#allocation2 + $0x31] sm:$0xff] }
 0x30d   : > { %2997 = vst.msk [vmem:[#allocation2 + $0x61] sm:$0xff] %vm226_vm1, %v2965_v10  ;;  %v2966_v29 = vmax.f32 %v2934_v39, 0.0  ;;  %v3074_v32 = vld [vmem:[#allocation2 + $0x19] sm:$0xff] }
 0x30e   : > { %2995 = vst.msk [vmem:[#allocation2 + $0x49] sm:$0xff] %vm226_vm1, %v2963_v2  ;;  %v2964_v52 = vmax.f32 %v2932_v0, 0.0  ;;  %v3077_v53 = vld [vmem:[#allocation2 + $0x39] sm:$0xff] }
 0x30f   : > { %2998 = vst.msk [vmem:[#allocation2 + $0x69] sm:$0xff] %vm226_vm1, %v2966_v29  ;;  %v3075_v37 = vld [vmem:[#allocation2 + $0x21] sm:$0xff]  ;;  %v8262_v7 = vpack.c.bf16 %v3077_v53, %v3076_v56 }
 0x310   : > { %2996 = vst.msk [vmem:[#allocation2 + $0x51] sm:$0xff] %vm226_vm1, %v2964_v52  ;;  %v6671_v44 = vpop.f32.mrb[8].mxu0  ;;  %v8258_v55 = vpack.c.bf16 %v3075_v37, %v3074_v32 }
 0x311   : > { %v2937_v62 = vadd.f32 %v6671_v44, %v8240_v35  ;;  %v2793_v3 = vpop.f32.mrb[9].mxu0 }
 0x312   : > { %v2935_v33 = vadd.f32 %v8240_v35, %v2793_v3  ;;  %v6672_v42 = vpop.f32.mrb[10].mxu0  ;;  %6696 = vmatmul.mubr.msk.bf16.vlgmr.msra.gmra.mrb[0].mxu1 %vm226_vm1, %v8258_v55 }
 0x313   : > { %v2969_v50 = vmax.f32 %v2937_v62, 0.0  ;;  %v2938_v51 = vadd.f32 %v6672_v42, %v8240_v35  ;;  %6728 = vmatpush3.bf16.msra.mxu1 %v3383_v28  ;;  %v2796_v46 = vpop.f32.mrb[11].mxu0  ;;  %6699 = vmatprep.mubr.msk.bf16.mxu1 %vm226_vm1, %v8262_v7 }
 0x314   : > { %v2967_v49 = vmax.f32 %v2935_v33, 0.0  ;;  %v2936_v8 = vadd.f32 %v8240_v35, %v2796_v46  ;;  %7522 = vmatprep.subr.msk.bf16.mxu1 %vm484_vm0, %v8267_v31  ;;  %v3080_v22 = vld [vmem:[#allocation2 + $0x61] sm:$0xff] }
 0x315   : > { %3001 = vst.msk [vmem:[#allocation2 + $0x91] sm:$0xff] %vm226_vm1, %v2969_v50  ;;  %v2970_v48 = vmax.f32 %v2938_v51, 0.0  ;;  %v3078_v24 = vld [vmem:[#allocation2 + $0x49] sm:$0xff] }
 0x316   : > { %2999 = vst.msk [vmem:[#allocation2 + $0x79] sm:$0xff] %vm226_vm1, %v2967_v49  ;;  %v2968_v23 = vmax.f32 %v2936_v8, 0.0  ;;  %v3081_v20 = vld [vmem:[#allocation2 + $0x69] sm:$0xff] }
 0x317   : > { %3002 = vst.msk [vmem:[#allocation2 + $0x99] sm:$0xff] %vm226_vm1, %v2970_v48  ;;  %v3079_v19 = vld [vmem:[#allocation2 + $0x51] sm:$0xff]  ;;  %v8285_v36 = vpack.c.bf16 %v3081_v20, %v3080_v22 }
 0x318   : > { %3000 = vst.msk [vmem:[#allocation2 + $0x81] sm:$0xff] %vm226_vm1, %v2968_v23  ;;  %v6675_v21 = vpop.f32.mrb[12].mxu0  ;;  %v8282_v16 = vpack.c.bf16 %v3079_v19, %v3078_v24 }
 0x319   : > { %v2941_v25 = vadd.f32 %v6675_v21, %v8240_v35  ;;  %v2809_v26 = vpop.f32.mrb[13].mxu0 }
 0x31a   : > { %v2939_v58 = vadd.f32 %v8240_v35, %v2809_v26  ;;  %v6676_v45 = vpop.f32.mrb[14].mxu0  ;;  %6700 = vmatmul.mubr.msk.bf16.gmra.mrb[4].mxu1 %vm226_vm1, %v8282_v16 }
 0x31b   : > { %v2973_v47 = vmax.f32 %v2941_v25, 0.0  ;;  %v2942_v63 = vadd.f32 %v6676_v45, %v8240_v35  ;;  %v2812_v43 = vpop.f32.mrb[15].mxu0  ;;  %6703 = vmatprep.mubr.msk.bf16.mxu1 %vm226_vm1, %v8285_v36 }
 0x31c   : > { %v2971_v61 = vmax.f32 %v2939_v58, 0.0  ;;  %v2940_v38 = vadd.f32 %v8240_v35, %v2812_v43  ;;  %v3084_v40 = vld [vmem:[#allocation2 + $0x91] sm:$0xff] }
 0x31d   : > { %3005 = vst.msk [vmem:[#allocation2 + $0xc1] sm:$0xff] %vm226_vm1, %v2973_v47  ;;  %v2974_v41 = vmax.f32 %v2942_v63, 0.0  ;;  %v3082_v30 = vld [vmem:[#allocation2 + $0x79] sm:$0xff] }
 0x31e   : > { %3003 = vst.msk [vmem:[#allocation2 + $0xa9] sm:$0xff] %vm226_vm1, %v2971_v61  ;;  %v2972_v59 = vmax.f32 %v2940_v38, 0.0  ;;  %v3085_v60 = vld [vmem:[#allocation2 + $0x99] sm:$0xff] }
 0x31f   : > { %3006 = vst.msk [vmem:[#allocation2 + $0xc9] sm:$0xff] %vm226_vm1, %v2974_v41  ;;  %v3083_v34 = vld [vmem:[#allocation2 + $0x81] sm:$0xff]  ;;  %v8301_v39 = vpack.c.bf16 %v3085_v60, %v3084_v40 }
 0x320   : > { %3004 = vst.msk [vmem:[#allocation2 + $0xb1] sm:$0xff] %vm226_vm1, %v2972_v59  ;;  %v6679_v54 = vpop.f32.mrb[16].mxu0  ;;  %v8298_v57 = vpack.c.bf16 %v3083_v34, %v3082_v30 }
 0x321   : > { %v2945_v1 = vadd.f32 %v6679_v54, %v8240_v35  ;;  %v2825_v10 = vpop.f32.mrb[17].mxu0 }
 0x322   : > { %v2943_v27 = vadd.f32 %v8240_v35, %v2825_v10  ;;  %v6680_v2 = vpop.f32.mrb[18].mxu0  ;;  %6704 = vmatmul.mubr.msk.bf16.gmra.mrb[8].mxu1 %vm226_vm1, %v8298_v57 }
 0x323   : > { %v2977_v0 = vmax.f32 %v2945_v1, 0.0  ;;  %v2946_v29 = vadd.f32 %v6680_v2, %v8240_v35  ;;  %v2828_v52 = vpop.f32.mrb[19].mxu0  ;;  %6707 = vmatprep.mubr.msk.bf16.mxu1 %vm226_vm1, %v8301_v39 }
 0x324   : > { %v2975_v53 = vmax.f32 %v2943_v27, 0.0  ;;  %v2944_v32 = vadd.f32 %v8240_v35, %v2828_v52  ;;  %v3088_v42 = vld [vmem:[#allocation2 + $0xc1] sm:$0xff] }
 0x325   : > { %3009 = vst.msk [vmem:[#allocation2 + $0xf1] sm:$0xff] %vm226_vm1, %v2977_v0  ;;  %v2978_v37 = vmax.f32 %v2946_v29, 0.0  ;;  %v3086_v56 = vld [vmem:[#allocation2 + $0xa9] sm:$0xff] }
 0x326   : > { %3007 = vst.msk [vmem:[#allocation2 + $0xd9] sm:$0xff] %vm226_vm1, %v2975_v53  ;;  %v2976_v44 = vmax.f32 %v2944_v32, 0.0  ;;  %v3089_v28 = vld [vmem:[#allocation2 + $0xc9] sm:$0xff] }
 0x327   : > { %3010 = vst.msk [vmem:[#allocation2 + $0xf9] sm:$0xff] %vm226_vm1, %v2978_v37  ;;  %v3087_v62 = vld [vmem:[#allocation2 + $0xb1] sm:$0xff]  ;;  %v8317_v46 = vpack.c.bf16 %v3089_v28, %v3088_v42 }
 0x328   : > { %3008 = vst.msk [vmem:[#allocation2 + $0xe1] sm:$0xff] %vm226_vm1, %v2976_v44  ;;  %v6683_v3 = vpop.f32.mrb[20].mxu0  ;;  %v8314_v33 = vpack.c.bf16 %v3087_v62, %v3086_v56 }
 0x329   : > { %v2949_v50 = vadd.f32 %v6683_v3, %v8240_v35  ;;  %v2841_v51 = vpop.f32.mrb[21].mxu0 }
 0x32a   : > { %v2947_v49 = vadd.f32 %v8240_v35, %v2841_v51  ;;  %v6684_v8 = vpop.f32.mrb[22].mxu0  ;;  %6708 = vmatmul.mubr.msk.bf16.gmra.mrb[12].mxu1 %vm226_vm1, %v8314_v33 }
 0x32b   : > { %v2981_v48 = vmax.f32 %v2949_v50, 0.0  ;;  %v2950_v23 = vadd.f32 %v6684_v8, %v8240_v35  ;;  %v2844_v20 = vpop.f32.mrb[23].mxu0  ;;  %6711 = vmatprep.mubr.msk.bf16.mxu1 %vm226_vm1, %v8317_v46 }
 0x32c   : > { %v2979_v24 = vmax.f32 %v2947_v49, 0.0  ;;  %v2948_v19 = vadd.f32 %v8240_v35, %v2844_v20  ;;  %v3092_v63 = vld [vmem:[#allocation2 + $0xf1] sm:$0xff] }
 0x32d   : > { %3013 = vst.msk [vmem:[#allocation2 + $0x121] sm:$0xff] %vm226_vm1, %v2981_v48  ;;  %v2982_v21 = vmax.f32 %v2950_v23, 0.0  ;;  %v3090_v26 = vld [vmem:[#allocation2 + $0xd9] sm:$0xff] }
 0x32e   : > { %3011 = vst.msk [vmem:[#allocation2 + $0x109] sm:$0xff] %vm226_vm1, %v2979_v24  ;;  %v2980_v22 = vmax.f32 %v2948_v19, 0.0  ;;  %v3093_v25 = vld [vmem:[#allocation2 + $0xf9] sm:$0xff] }
 0x32f   : > { %3014 = vst.msk [vmem:[#allocation2 + $0x129] sm:$0xff] %vm226_vm1, %v2982_v21  ;;  %v3091_v58 = vld [vmem:[#allocation2 + $0xe1] sm:$0xff]  ;;  %v8333_v38 = vpack.c.bf16 %v3093_v25, %v3092_v63 }
 0x330   : > { %3012 = vst.msk [vmem:[#allocation2 + $0x111] sm:$0xff] %vm226_vm1, %v2980_v22  ;;  %v6687_v45 = vpop.f32.mrb[24].mxu0  ;;  %v8330_v47 = vpack.c.bf16 %v3091_v58, %v3090_v26  ;;  %v3024_v22 = vld [vmem:[#allocation2 + $0x8] sm:$0xff]  ;;  %v3026_v63 = vld [vmem:[#allocation2 + $0x20] sm:$0xff] }
 0x331   : > { %v2953_v43 = vadd.f32 %v6687_v45, %v8240_v35  ;;  %v2857_v61 = vpop.f32.mrb[25].mxu0 }
 0x332   : > { %v2951_v41 = vadd.f32 %v8240_v35, %v2857_v61  ;;  %v6688_v59 = vpop.f32.mrb[26].mxu0  ;;  %6712 = vmatmul.mubr.msk.bf16.gmra.mrb[16].mxu1 %vm226_vm1, %v8330_v47  ;;  %v3025_v61 = vld [vmem:[#allocation2 + $0x18] sm:$0xff] }
 0x333   : > { %v2985_v60 = vmax.f32 %v2953_v43, 0.0  ;;  %v2954_v30 = vadd.f32 %v6688_v59, %v8240_v35  ;;  %v2860_v34 = vpop.f32.mrb[27].mxu0  ;;  %6715 = vmatprep.mubr.msk.bf16.mxu1 %vm226_vm1, %v8333_v38  ;;  %v3028_v43 = vld [vmem:[#allocation2 + $0x38] sm:$0xff]  ;;  %v3645_v59 = vsel %vm484_vm0, %v8267_v31, 0  ;;  %v3032_v31 = vld [vmem:[#allocation2 + $0x68] sm:$0xff] }
 0x334   : > { %v2983_v54 = vmax.f32 %v2951_v41, 0.0  ;;  %v2952_v40 = vadd.f32 %v8240_v35, %v2860_v34  ;;  %v3096_v53 = vld [vmem:[#allocation2 + $0x121] sm:$0xff]  ;;  %v8375_v41 = vpack.c.bf16 %v3026_v63, %v3025_v61 }
 0x335   : > { %3017 = vst.msk [vmem:[#allocation2 + $0x151] sm:$0xff] %vm226_vm1, %v2985_v60  ;;  %v2986_v1 = vmax.f32 %v2954_v30, 0.0  ;;  %v3094_v2 = vld [vmem:[#allocation2 + $0x109] sm:$0xff]  ;;  %v8384_v34 = vld [vmem:[%s8868_s3 + $0x6] sm:$0x3] }
 0x336   : > { %3015 = vst.msk [vmem:[#allocation2 + $0x139] sm:$0xff] %vm226_vm1, %v2983_v54  ;;  %v2984_v10 = vmax.f32 %v2952_v40, 0.0  ;;  %v3097_v27 = vld [vmem:[#allocation2 + $0x129] sm:$0xff] }
 0x337   : > { %3018 = vst.msk [vmem:[#allocation2 + $0x159] sm:$0xff] %vm226_vm1, %v2986_v1  ;;  %v3095_v0 = vld [vmem:[#allocation2 + $0x111] sm:$0xff]  ;;  %v8349_v44 = vpack.c.bf16 %v3097_v27, %v3096_v53  ;;  %v3029_v40 = vld [vmem:[#allocation2 + $0x48] sm:$0xff] }
 0x338   : > { %3016 = vst.msk [vmem:[#allocation2 + $0x141] sm:$0xff] %vm226_vm1, %v2984_v10  ;;  %v6691_v29 = vpop.f32.mrb[28].mxu0  ;;  %v8346_v52 = vpack.c.bf16 %v3095_v0, %v3094_v2  ;;  %v3027_v60 = vld [vmem:[#allocation2 + $0x30] sm:$0xff]  ;;  %v3031_v10 = vld [vmem:[#allocation2 + $0x60] sm:$0xff]  ;;  %v3036_v0 = vld [vmem:[#allocation2 + $0x98] sm:$0xff] }
 0x339   : > { %v2957_v32 = vadd.f32 %v6691_v29, %v8240_v35  ;;  %v2873_v37 = vpop.f32.mrb[29].mxu0  ;;  %v8379_v30 = vpack.c.bf16 %v3028_v43, %v3027_v60  ;;  %v3030_v54 = vld [vmem:[#allocation2 + $0x50] sm:$0xff]  ;;  %v8394_v27 = vpack.c.bf16 %v3032_v31, %v3031_v10  ;;  %v3034_v2 = vld [vmem:[#allocation2 + $0x80] sm:$0xff]  ;;  %v3033_v29 = vld [vmem:[#allocation2 + $0x78] sm:$0xff] }
 0x33a   : > { %v2955_v28 = vadd.f32 %v8240_v35, %v2873_v37  ;;  %v6692_v56 = vpop.f32.mrb[30].mxu0  ;;  %6716 = vmatmul.mubr.msk.bf16.gmra.mrb[20].mxu1 %vm226_vm1, %v8346_v52  ;;  %v8392_v1 = vpack.c.bf16 %v3030_v54, %v3029_v40  ;;  %v8400_v53 = vpack.c.bf16 %v3034_v2, %v3033_v29  ;;  %v3546_v31 = vld [vmem:[#allocation2 + $0x2] sm:$0xff]  ;;  %v3547_v40 = vld [vmem:[#allocation2 + $0xa] sm:$0xff] }
 0x33b   : > { %v2989_v62 = vmax.f32 %v2957_v32, 0.0  ;;  %v2958_v3 = vadd.f32 %v6692_v56, %v8240_v35  ;;  %v2876_v42 = vpop.f32.mrb[31].mxu0  ;;  %6719 = vmatprep.mubr.msk.bf16.mxu1 %vm226_vm1, %v8349_v44  ;;  %v3035_v32 = vld [vmem:[#allocation2 + $0x90] sm:$0xff]  ;;  %v3040_v56 = vld [vmem:[#allocation2 + $0xc8] sm:$0xff] }
 0x33c   : > { %v2987_v50 = vmax.f32 %v2955_v28, 0.0  ;;  %v2956_v51 = vadd.f32 %v8240_v35, %v2876_v42  ;;  %v3100_v19 = vld [vmem:[#allocation2 + $0x151] sm:$0xff]  ;;  %v3023_v35 = vld [vmem:[#allocation2] sm:$0xff]  ;;  %v8402_v37 = vpack.c.bf16 %v3036_v0, %v3035_v32  ;;  %v3578_v0 = vpack.c.bf16 %v3547_v40, %v3546_v31 }
 0x33d   : > { %3021 = vst.msk [vmem:[#allocation2 + $0x181] sm:$0xff] %vm226_vm1, %v2989_v62  ;;  %v2990_v49 = vmax.f32 %v2958_v3, 0.0  ;;  %v3098_v23 = vld [vmem:[#allocation2 + $0x139] sm:$0xff]  ;;  %v3055_v58 = vpack.c.bf16 %v3024_v22, %v3023_v35  ;;  %v3038_v28 = vld [vmem:[#allocation2 + $0xb0] sm:$0xff]  ;;  %v3037_v62 = vld [vmem:[#allocation2 + $0xa8] sm:$0xff] }
 0x33e   : > { %3019 = vst.msk [vmem:[#allocation2 + $0x169] sm:$0xff] %vm226_vm1, %v2987_v50  ;;  %v2988_v8 = vmax.f32 %v2956_v51, 0.0  ;;  %v3101_v48 = vld [vmem:[#allocation2 + $0x159] sm:$0xff]  ;;  %v8408_v3 = vpack.c.bf16 %v3038_v28, %v3037_v62  ;;  %v3048_v35 = vld [vmem:[#allocation2 + $0x128] sm:$0xff]  ;;  %v3051_v60 = vld [vmem:[#allocation2 + $0x150] sm:$0xff] }
 0x33f   : > { %3022 = vst.msk [vmem:[#allocation2 + $0x189] sm:$0xff] %vm226_vm1, %v2990_v49  ;;  %v3099_v20 = vld [vmem:[#allocation2 + $0x141] sm:$0xff]  ;;  %v8364_v21 = vpack.c.bf16 %v3101_v48, %v3100_v19  ;;  %v3044_v49 = vld [vmem:[#allocation2 + $0xf8] sm:$0xff]  ;;  %v3046_v19 = vld [vmem:[#allocation2 + $0x110] sm:$0xff] }
 0x340   : > { %3020 = vst.msk [vmem:[#allocation2 + $0x171] sm:$0xff] %vm226_vm1, %v2988_v8  ;;  %v8362_v24 = vpack.c.bf16 %v3099_v20, %v3098_v23  ;;  %v3039_v42 = vld [vmem:[#allocation2 + $0xc0] sm:$0xff]  ;;  %v3041_v8 = vld [vmem:[#allocation2 + $0xd8] sm:$0xff]  ;;  %v3043_v23 = vld [vmem:[#allocation2 + $0xf0] sm:$0xff] }
 0x341   : > { %v8410_v50 = vpack.c.bf16 %v3040_v56, %v3039_v42  ;;  %v3042_v51 = vld [vmem:[#allocation2 + $0xe0] sm:$0xff]  ;;  %v8418_v20 = vpack.c.bf16 %v3044_v49, %v3043_v23  ;;  %v3045_v22 = vld [vmem:[#allocation2 + $0x108] sm:$0xff]  ;;  %v3052_v43 = vld [vmem:[#allocation2 + $0x158] sm:$0xff] }
 0x342   : > { %6720 = vmatmul.mubr.msk.bf16.gmra.mrb[24].mxu1 %vm226_vm1, %v8362_v24  ;;  %v8416_v48 = vpack.c.bf16 %v3042_v51, %v3041_v8  ;;  %v3050_v63 = vld [vmem:[#allocation2 + $0x140] sm:$0xff]  ;;  %v3049_v61 = vld [vmem:[#allocation2 + $0x138] sm:$0xff]  ;;  %v8434_v54 = vpack.c.bf16 %v3052_v43, %v3051_v60  ;;  %v3939_v51 = vsel %vm484_vm0, %v8384_v34, 0  ;;  %v5991_v8 = vld [vmem:[%s8868_s3 + $0x8] sm:$0x3] }
 0x343   : > { %6723 = vmatprep.mubr.msk.bf16.mxu1 %vm226_vm1, %v8364_v21  ;;  %v3548_v32 = vld [vmem:[#allocation2 + $0x1a] sm:$0xff]  ;;  %v3549_v28 = vld [vmem:[#allocation2 + $0x22] sm:$0xff]  ;;  %v3550_v56 = vld [vmem:[#allocation2 + $0x32] sm:$0xff] }
 0x344   : > { %v3551_v62 = vld [vmem:[#allocation2 + $0x3a] sm:$0xff]  ;;  %v8445_v42 = vpack.c.bf16 %v3549_v28, %v3548_v32  ;;  %v3552_v23 = vld [vmem:[#allocation2 + $0x4a] sm:$0xff]  ;;  %v3557_v43 = vld [vmem:[#allocation2 + $0x82] sm:$0xff] }
 0x345   : > { %v3102_v25 = vld [vmem:[#allocation2 + $0x169] sm:$0xff]  ;;  %v8449_v49 = vpack.c.bf16 %v3551_v62, %v3550_v56  ;;  %v3559_v60 = vld [vmem:[#allocation2 + $0x9a] sm:$0xff] }
 0x346   : > { %v3053_v2 = vld [vmem:[#allocation2 + $0x168] sm:$0xff]  ;;  %v3564_v62 = vld [vmem:[#allocation2 + $0xda] sm:$0xff] }
 0x347   : > { %v3103_v26 = vld [vmem:[#allocation2 + $0x171] sm:$0xff] }
 0x348   : > { %v8370_v45 = vpack.c.bf16 %v3103_v26, %v3102_v25  ;;  %v8424_v25 = vpack.c.bf16 %v3046_v19, %v3045_v22  ;;  %v3047_v26 = vld [vmem:[#allocation2 + $0x120] sm:$0xff]  ;;  %v3054_v10 = vld [vmem:[#allocation2 + $0x170] sm:$0xff] }
 0x349   : > { %v8440_v29 = vpack.c.bf16 %v3054_v10, %v3053_v2  ;;  %v3553_v19 = vld [vmem:[#allocation2 + $0x52] sm:$0xff]  ;;  %v3555_v22 = vld [vmem:[#allocation2 + $0x6a] sm:$0xff] }
 0x34a   : > { %6724 = vmatmul.mubr.msk.bf16.gmra.mrb[28].mxu1 %vm226_vm1, %v8370_v45  ;;  %v3560_v10 = vld [vmem:[#allocation2 + $0xaa] sm:$0xff]  ;;  %v3561_v2 = vld [vmem:[#allocation2 + $0xb2] sm:$0xff] }
 0x34b   : > { %6729 = vmatprep.mubr.msk.bf16.mxu1 %vm226_vm1, %v3055_v58  ;;  %v8426_v58 = vpack.c.bf16 %v3048_v35, %v3047_v26  ;;  %v3554_v35 = vld [vmem:[#allocation2 + $0x62] sm:$0xff]  ;;  %v3563_v32 = vld [vmem:[#allocation2 + $0xca] sm:$0xff]  ;;  %v8475_v28 = vpack.c.bf16 %v3561_v2, %v3560_v10 }
 0x34c   : > { %v8461_v26 = vpack.c.bf16 %v3555_v22, %v3554_v35 }
 0x352   : > { %6730 = vmatmul.mubr.msk.bf16.vlgmr.msra.gmra.mrb[0].mxu1 %vm226_vm1, %v8375_v41 }
 0x353   : > { %6762 = vmatpush3.bf16.msra.mxu1 %v3645_v59  ;;  %6733 = vmatprep.mubr.msk.bf16.mxu1 %vm226_vm1, %v8379_v30  ;;  %v8432_v59 = vpack.c.bf16 %v3050_v63, %v3049_v61  ;;  %v3556_v63 = vld [vmem:[#allocation2 + $0x7a] sm:$0xff]  ;;  %v3558_v61 = vld [vmem:[#allocation2 + $0x92] sm:$0xff] }
 0x354   : > { %7523 = vmatprep.subr.msk.bf16.mxu1 %vm484_vm0, %v8384_v34  ;;  %v8459_v34 = vpack.c.bf16 %v3553_v19, %v3552_v23  ;;  %v8467_v31 = vpack.c.bf16 %v3557_v43, %v3556_v63  ;;  %v8469_v40 = vpack.c.bf16 %v3559_v60, %v3558_v61  ;;  %v3566_v23 = vld [vmem:[#allocation2 + $0xf2] sm:$0xff]  ;;  %v3567_v19 = vld [vmem:[#allocation2 + $0xfa] sm:$0xff]  ;;  %v3568_v63 = vld [vmem:[#allocation2 + $0x10a] sm:$0xff] }
 0x355   : > { %v8485_v22 = vpack.c.bf16 %v3567_v19, %v3566_v23  ;;  %v3569_v43 = vld [vmem:[#allocation2 + $0x112] sm:$0xff]  ;;  %v3570_v61 = vld [vmem:[#allocation2 + $0x122] sm:$0xff]  ;;  %v3571_v60 = vld [vmem:[#allocation2 + $0x12a] sm:$0xff] }
 0x356   : > { %v8491_v10 = vpack.c.bf16 %v3569_v43, %v3568_v63  ;;  %v8493_v2 = vpack.c.bf16 %v3571_v60, %v3570_v61  ;;  %v3576_v63 = vld [vmem:[#allocation2 + $0x16a] sm:$0xff]  ;;  %v3577_v43 = vld [vmem:[#allocation2 + $0x172] sm:$0xff]  ;;  %v4233_v60 = vsel %vm484_vm0, %v5991_v8, 0 }
 0x357   : > { %v8507_v61 = vpack.c.bf16 %v3577_v43, %v3576_v63 }
 0x35a   : > { %6734 = vmatmul.mubr.msk.bf16.gmra.mrb[4].mxu1 %vm226_vm1, %v8392_v1 }
 0x35b   : > { %6737 = vmatprep.mubr.msk.bf16.mxu1 %vm226_vm1, %v8394_v27 }
 0x362   : > { %6738 = vmatmul.mubr.msk.bf16.gmra.mrb[8].mxu1 %vm226_vm1, %v8400_v53 }
 0x363   : > { %6741 = vmatprep.mubr.msk.bf16.mxu1 %vm226_vm1, %v8402_v37 }
 0x36a   : > { %6742 = vmatmul.mubr.msk.bf16.gmra.mrb[12].mxu1 %vm226_vm1, %v8408_v3 }
 0x36b   : > { %6745 = vmatprep.mubr.msk.bf16.mxu1 %vm226_vm1, %v8410_v50 }
 0x372   : > { %6746 = vmatmul.mubr.msk.bf16.gmra.mrb[16].mxu1 %vm226_vm1, %v8416_v48 }
 0x373   : > { %6749 = vmatprep.mubr.msk.bf16.mxu1 %vm226_vm1, %v8418_v20 }
 0x37a   : > { %6750 = vmatmul.mubr.msk.bf16.gmra.mrb[20].mxu1 %vm226_vm1, %v8424_v25 }
 0x37b   : > { %6753 = vmatprep.mubr.msk.bf16.mxu1 %vm226_vm1, %v8426_v58 }
 0x382   : > { %6754 = vmatmul.mubr.msk.bf16.gmra.mrb[24].mxu1 %vm226_vm1, %v8432_v59 }
 0x383   : > { %6757 = vmatprep.mubr.msk.bf16.mxu1 %vm226_vm1, %v8434_v54 }
 0x38a   : > { %6758 = vmatmul.mubr.msk.bf16.gmra.mrb[28].mxu1 %vm226_vm1, %v8440_v29 }
 0x38b   : > { %6763 = vmatprep.mubr.msk.bf16.mxu1 %vm226_vm1, %v3578_v0  ;;  %v3562_v0 = vld [vmem:[#allocation2 + $0xc2] sm:$0xff] }
 0x38c   : > { %v8477_v56 = vpack.c.bf16 %v3563_v32, %v3562_v0  ;;  %v3572_v0 = vld [vmem:[#allocation2 + $0x13a] sm:$0xff]  ;;  %v3573_v32 = vld [vmem:[#allocation2 + $0x142] sm:$0xff] }
 0x38d   : > { %v8499_v23 = vpack.c.bf16 %v3573_v32, %v3572_v0  ;;  %v6008_v0 = vld [vmem:[%s8868_s3 + $0xa] sm:$0x3] }
 0x392   : > { %6764 = vmatmul.mubr.msk.bf16.vlgmr.msra.gmra.mrb[0].mxu1 %vm226_vm1, %v8445_v42 }
 0x393   : > { %6796 = vmatpush3.bf16.msra.mxu1 %v3939_v51  ;;  %6767 = vmatprep.mubr.msk.bf16.mxu1 %vm226_vm1, %v8449_v49  ;;  %v3565_v51 = vld [vmem:[#allocation2 + $0xe2] sm:$0xff] }
 0x394   : > { %7524 = vmatprep.subr.msk.bf16.mxu1 %vm484_vm0, %v5991_v8  ;;  %v8483_v35 = vpack.c.bf16 %v3565_v51, %v3564_v62  ;;  %v3574_v62 = vld [vmem:[#allocation2 + $0x152] sm:$0xff]  ;;  %v3575_v51 = vld [vmem:[#allocation2 + $0x15a] sm:$0xff] }
 0x395   : > { %v8501_v19 = vpack.c.bf16 %v3575_v51, %v3574_v62  ;;  %v3870_v8 = vld [vmem:[#allocation2 + $0x180] sm:$0xff]  ;;  %v4527_v62 = vsel %vm484_vm0, %v6008_v0, 0  ;;  %v6025_v51 = vld [vmem:[%s8868_s3 + $0xc] sm:$0x3] }
 0x39a   : > { %6768 = vmatmul.mubr.msk.bf16.gmra.mrb[4].mxu1 %vm226_vm1, %v8459_v34 }
 0x39b   : > { %6771 = vmatprep.mubr.msk.bf16.mxu1 %vm226_vm1, %v8461_v26 }
 0x3a2   : > { %6772 = vmatmul.mubr.msk.bf16.gmra.mrb[8].mxu1 %vm226_vm1, %v8467_v31 }
 0x3a3   : > { %6775 = vmatprep.mubr.msk.bf16.mxu1 %vm226_vm1, %v8469_v40 }
 0x3aa   : > { %6776 = vmatmul.mubr.msk.bf16.gmra.mrb[12].mxu1 %vm226_vm1, %v8475_v28 }
 0x3ab   : > { %6779 = vmatprep.mubr.msk.bf16.mxu1 %vm226_vm1, %v8477_v56 }
 0x3b2   : > { %6780 = vmatmul.mubr.msk.bf16.gmra.mrb[16].mxu1 %vm226_vm1, %v8483_v35 }
 0x3b3   : > { %6783 = vmatprep.mubr.msk.bf16.mxu1 %vm226_vm1, %v8485_v22 }
 0x3ba   : > { %6784 = vmatmul.mubr.msk.bf16.gmra.mrb[20].mxu1 %vm226_vm1, %v8491_v10 }
 0x3bb   : > { %6787 = vmatprep.mubr.msk.bf16.mxu1 %vm226_vm1, %v8493_v2 }
 0x3c2   : > { %6788 = vmatmul.mubr.msk.bf16.gmra.mrb[24].mxu1 %vm226_vm1, %v8499_v23 }
 0x3c3   : > { %6791 = vmatprep.mubr.msk.bf16.mxu1 %vm226_vm1, %v8501_v19 }
 0x3ca   : > { %6792 = vmatmul.mubr.msk.bf16.gmra.mrb[28].mxu1 %vm226_vm1, %v8507_v61 }
 0x3cb   : > { %6797 = vmatprep.mubr.msk.bf16.mxu1 %vm226_vm1, %v8375_v41  ;;  %v3871_v41 = vld [vmem:[#allocation2 + $0x188] sm:$0xff] }
 0x3cc   : > { %v8546_v32 = vpack.c.bf16 %v3871_v41, %v3870_v8  ;;  %v5022_v41 = vld [vmem:[#allocation2 + $0x79] sm:$0xff] }
 0x3d2   : > { %6798 = vmatmul.mubr.msk.bf16.vlgmr.msra.gmra.mrb[0].mxu1 %vm226_vm1, %v8379_v30 }
 0x3d3   : > { %6830 = vmatpush3.bf16.msra.mxu1 %v4233_v60  ;;  %6801 = vmatprep.mubr.msk.bf16.mxu1 %vm226_vm1, %v8392_v1  ;;  %v6059_v60 = vld [vmem:[%s8868_s3 + $0x10] sm:$0x3] }
 0x3d4   : > { %7525 = vmatprep.subr.msk.bf16.mxu1 %vm484_vm0, %v6008_v0  ;;  %v5025_v0 = vld [vmem:[#allocation2 + $0x99] sm:$0xff] }
 0x3da   : > { %6802 = vmatmul.mubr.msk.bf16.gmra.mrb[4].mxu1 %vm226_vm1, %v8394_v27 }
 0x3db   : > { %6805 = vmatprep.mubr.msk.bf16.mxu1 %vm226_vm1, %v8400_v53 }
 0x3e2   : > { %6806 = vmatmul.mubr.msk.bf16.gmra.mrb[8].mxu1 %vm226_vm1, %v8402_v37 }
 0x3e3   : > { %6809 = vmatprep.mubr.msk.bf16.mxu1 %vm226_vm1, %v8408_v3 }
 0x3ea   : > { %6810 = vmatmul.mubr.msk.bf16.gmra.mrb[12].mxu1 %vm226_vm1, %v8410_v50 }
 0x3eb   : > { %6813 = vmatprep.mubr.msk.bf16.mxu1 %vm226_vm1, %v8416_v48 }
 0x3f2   : > { %6814 = vmatmul.mubr.msk.bf16.gmra.mrb[16].mxu1 %vm226_vm1, %v8418_v20 }
 0x3f3   : > { %6817 = vmatprep.mubr.msk.bf16.mxu1 %vm226_vm1, %v8424_v25 }
 0x3fa   : > { %6818 = vmatmul.mubr.msk.bf16.gmra.mrb[20].mxu1 %vm226_vm1, %v8426_v58 }
 0x3fb   : > { %6821 = vmatprep.mubr.msk.bf16.mxu1 %vm226_vm1, %v8432_v59 }
 0x402   : > { %6822 = vmatmul.mubr.msk.bf16.gmra.mrb[24].mxu1 %vm226_vm1, %v8434_v54 }
 0x403   : > { %6825 = vmatprep.mubr.msk.bf16.mxu1 %vm226_vm1, %v8440_v29 }
 0x40a   : > { %6826 = vmatmul.mubr.msk.bf16.gmra.mrb[28].mxu1 %vm226_vm1, %v8546_v32 }
 0x40b   : > { %6831 = vmatprep.mubr.msk.bf16.mxu1 %vm226_vm1, %v8258_v55  ;;  %v4165_v55 = vld [vmem:[#allocation2 + $0x189] sm:$0xff] }
 0x412   : > { %6832 = vmatmul.mubr.msk.bf16.vlgmr.msra.gmra.mrb[0].mxu1 %vm226_vm1, %v8262_v7  ;;  %v4164_v7 = vld [vmem:[#allocation2 + $0x181] sm:$0xff] }
 0x413   : > { %6864 = vmatpush3.bf16.msra.mxu1 %v4527_v62  ;;  %6835 = vmatprep.mubr.msk.bf16.mxu1 %vm226_vm1, %v8282_v16  ;;  %v8585_v16 = vpack.c.bf16 %v4165_v55, %v4164_v7 }
 0x414   : > { %7526 = vmatprep.subr.msk.bf16.mxu1 %vm484_vm0, %v6025_v51 }
 0x41a   : > { %6836 = vmatmul.mubr.msk.bf16.gmra.mrb[4].mxu1 %vm226_vm1, %v8285_v36  ;;  %v4821_v36 = vsel %vm484_vm0, %v6025_v51, 0 }
 0x41b   : > { %6839 = vmatprep.mubr.msk.bf16.mxu1 %vm226_vm1, %v8298_v57  ;;  %v6042_v57 = vld [vmem:[%s8868_s3 + $0xe] sm:$0x3] }
 0x41c   : > { %v5115_v43 = vsel %vm484_vm0, %v6042_v57, 0 }
 0x422   : > { %6840 = vmatmul.mubr.msk.bf16.gmra.mrb[8].mxu1 %vm226_vm1, %v8301_v39  ;;  %v4458_v39 = vld [vmem:[#allocation2 + $0x182] sm:$0xff] }
 0x423   : > { %6843 = vmatprep.mubr.msk.bf16.mxu1 %vm226_vm1, %v8314_v33 }
 0x42a   : > { %6844 = vmatmul.mubr.msk.bf16.gmra.mrb[12].mxu1 %vm226_vm1, %v8317_v46 }
 0x42b   : > { %6847 = vmatprep.mubr.msk.bf16.mxu1 %vm226_vm1, %v8330_v47 }
 0x432   : > { %6848 = vmatmul.mubr.msk.bf16.gmra.mrb[16].mxu1 %vm226_vm1, %v8333_v38 }
 0x433   : > { %6851 = vmatprep.mubr.msk.bf16.mxu1 %vm226_vm1, %v8346_v52 }
 0x43a   : > { %6852 = vmatmul.mubr.msk.bf16.gmra.mrb[20].mxu1 %vm226_vm1, %v8349_v44 }
 0x43b   : > { %6855 = vmatprep.mubr.msk.bf16.mxu1 %vm226_vm1, %v8362_v24 }
 0x442   : > { %6856 = vmatmul.mubr.msk.bf16.gmra.mrb[24].mxu1 %vm226_vm1, %v8364_v21 }
 0x443   : > { %6859 = vmatprep.mubr.msk.bf16.mxu1 %vm226_vm1, %v8370_v45 }
 0x44a   : > { %6860 = vmatmul.mubr.msk.bf16.gmra.mrb[28].mxu1 %vm226_vm1, %v8585_v16 }
 0x44b   : > { %6865 = vmatprep.mubr.msk.bf16.mxu1 %vm226_vm1, %v8445_v42  ;;  %v4459_v42 = vld [vmem:[#allocation2 + $0x18a] sm:$0xff] }
 0x44c   : > { %v8624_v63 = vpack.c.bf16 %v4459_v42, %v4458_v39 }
 0x452   : > { %6866 = vmatmul.mubr.msk.bf16.vlgmr.msra.gmra.mrb[0].mxu1 %vm226_vm1, %v8449_v49 }
 0x453   : > { %6898 = vmatpush3.bf16.msra.mxu1 %v4821_v36  ;;  %6869 = vmatprep.mubr.msk.bf16.mxu1 %vm226_vm1, %v8459_v34 }
 0x454   : > { %7527 = vmatprep.subr.msk.bf16.mxu1 %vm484_vm0, %v6042_v57 }
 0x45a   : > { %6870 = vmatmul.mubr.msk.bf16.gmra.mrb[4].mxu1 %vm226_vm1, %v8461_v26 }
 0x45b   : > { %6873 = vmatprep.mubr.msk.bf16.mxu1 %vm226_vm1, %v8467_v31 }
 0x462   : > { %6874 = vmatmul.mubr.msk.bf16.gmra.mrb[8].mxu1 %vm226_vm1, %v8469_v40 }
 0x463   : > { %6877 = vmatprep.mubr.msk.bf16.mxu1 %vm226_vm1, %v8475_v28 }
 0x46a   : > { %6878 = vmatmul.mubr.msk.bf16.gmra.mrb[12].mxu1 %vm226_vm1, %v8477_v56 }
 0x46b   : > { %6881 = vmatprep.mubr.msk.bf16.mxu1 %vm226_vm1, %v8483_v35 }
 0x472   : > { %6882 = vmatmul.mubr.msk.bf16.gmra.mrb[16].mxu1 %vm226_vm1, %v8485_v22 }
 0x473   : > { %6885 = vmatprep.mubr.msk.bf16.mxu1 %vm226_vm1, %v8491_v10 }
 0x47a   : > { %6886 = vmatmul.mubr.msk.bf16.gmra.mrb[20].mxu1 %vm226_vm1, %v8493_v2 }
 0x47b   : > { %6889 = vmatprep.mubr.msk.bf16.mxu1 %vm226_vm1, %v8499_v23 }
 0x482   : > { %6890 = vmatmul.mubr.msk.bf16.gmra.mrb[24].mxu1 %vm226_vm1, %v8501_v19 }
 0x483   : > { %6893 = vmatprep.mubr.msk.bf16.mxu1 %vm226_vm1, %v8507_v61 }
 0x48a   : > { %6894 = vmatmul.mubr.msk.bf16.gmra.mrb[28].mxu1 %vm226_vm1, %v8624_v63 }
 0x48b   : > { %6899 = vmatprep.mubr.msk.bf16.mxu1 %vm226_vm1, %v8379_v30  ;;  %v4752_v30 = vld [vmem:[#allocation2 + $0x198] sm:$0xff] }
 0x492   : > { %6900 = vmatmul.mubr.msk.bf16.vlgmr.msra.gmra.mrb[0].mxu1 %vm226_vm1, %v8392_v1  ;;  %v4753_v1 = vld [vmem:[#allocation2 + $0x1a0] sm:$0xff] }
 0x493   : > { %6932 = vmatpush3.bf16.msra.mxu1 %v5115_v43  ;;  %6903 = vmatprep.mubr.msk.bf16.mxu1 %vm226_vm1, %v8394_v27  ;;  %v4769_v27 = vpack.c.bf16 %v4753_v1, %v4752_v30  ;;  %v8914_v30 = vld [vmem:[#allocation3_spill] sm:$0xff] }
 0x494   : > { %7528 = vmatprep.subr.msk.bf16.mxu1 %vm484_vm0, %v6059_v60 }
 0x49a   : > { %6904 = vmatmul.mubr.msk.bf16.gmra.mrb[4].mxu1 %vm226_vm1, %v8400_v53  ;;  %v5017_v53 = vld [vmem:[#allocation2 + $0x39] sm:$0xff] }
 0x49b   : > { %6907 = vmatprep.mubr.msk.bf16.mxu1 %vm226_vm1, %v8402_v37  ;;  %v5016_v37 = vld [vmem:[#allocation2 + $0x31] sm:$0xff] }
 0x4a2   : > { %6908 = vmatmul.mubr.msk.bf16.gmra.mrb[8].mxu1 %vm226_vm1, %v8408_v3  ;;  %v5048_v3 = vpack.c.bf16 %v5017_v53, %v5016_v37 }
 0x4a3   : > { %6911 = vmatprep.mubr.msk.bf16.mxu1 %vm226_vm1, %v8410_v50  ;;  %v5019_v50 = vld [vmem:[#allocation2 + $0x51] sm:$0xff] }
 0x4aa   : > { %6912 = vmatmul.mubr.msk.bf16.gmra.mrb[12].mxu1 %vm226_vm1, %v8416_v48  ;;  %v5021_v48 = vld [vmem:[#allocation2 + $0x69] sm:$0xff] }
 0x4ab   : > { %6915 = vmatprep.mubr.msk.bf16.mxu1 %vm226_vm1, %v8418_v20  ;;  %v5018_v20 = vld [vmem:[#allocation2 + $0x49] sm:$0xff] }
 0x4b2   : > { %6916 = vmatmul.mubr.msk.bf16.gmra.mrb[16].mxu1 %vm226_vm1, %v8424_v25  ;;  %v5049_v25 = vpack.c.bf16 %v5019_v50, %v5018_v20  ;;  %v8916_v20 = vld [vmem:[#allocation4_spill] sm:$0xff] }
 0x4b3   : > { %6919 = vmatprep.mubr.msk.bf16.mxu1 %vm226_vm1, %v8426_v58  ;;  %v5409_v58 = vsel %vm484_vm0, %v6059_v60, 0 }
 0x4ba   : > { %6920 = vmatmul.mubr.msk.bf16.gmra.mrb[20].mxu1 %vm226_vm1, %v8432_v59  ;;  %v5020_v59 = vld [vmem:[#allocation2 + $0x61] sm:$0xff] }
 0x4bb   : > { %6923 = vmatprep.mubr.msk.bf16.mxu1 %vm226_vm1, %v8434_v54  ;;  %v5050_v54 = vpack.c.bf16 %v5021_v48, %v5020_v59  ;;  %v8917_v59 = vld [vmem:[#allocation7_spill] sm:$0xff] }
 0x4c2   : > { %6924 = vmatmul.mubr.msk.bf16.gmra.mrb[24].mxu1 %vm226_vm1, %v8440_v29  ;;  %v5023_v29 = vld [vmem:[#allocation2 + $0x81] sm:$0xff] }
 0x4c3   : > { %6927 = vmatprep.mubr.msk.bf16.mxu1 %vm226_vm1, %v8546_v32  ;;  %v5051_v8 = vpack.c.bf16 %v5023_v29, %v5022_v41  ;;  %v5024_v32 = vld [vmem:[#allocation2 + $0x91] sm:$0xff]  ;;  %v8918_v29 = vld [vmem:[#allocation5_spill] sm:$0xff] }
 0x4c4   : > { %v5052_v62 = vpack.c.bf16 %v5025_v0, %v5024_v32 }
 0x4ca   : > { %6928 = vmatmul.mubr.msk.bf16.gmra.mrb[28].mxu1 %vm226_vm1, %v4769_v27 }
 0x4cb   : > { %6933 = vmatprep.mubr.msk.bf16.mxu1 %vm226_vm1, %v5048_v3  ;;  %v8915_v3 = vld [vmem:[#allocation6_spill] sm:$0xff] }
 0x4d2   : > { %6934 = vmatmul.mubr.msk.bf16.vlgmr.msra.gmra.mrb[0].mxu1 %vm226_vm1, %v5049_v25 }
 0x4d3   : > { %6966 = vmatpush3.bf16.msra.mxu1 %v5409_v58  ;;  %6937 = vmatprep.mubr.msk.bf16.mxu1 %vm226_vm1, %v5050_v54 }
 0x4da   : > { %6938 = vmatmul.mubr.msk.bf16.gmra.mrb[4].mxu1 %vm226_vm1, %v5051_v8 }
 0x4db   : > { %6941 = vmatprep.mubr.msk.bf16.mxu1 %vm226_vm1, %v5052_v62 }
 0x4e2   : > { %6942 = vmatmul.mubr.msk.bf16.gmra.mrb[8].mxu1 %vm226_vm1, %v8314_v33  ;;  %v5046_v33 = vld [vmem:[#allocation2 + $0x199] sm:$0xff] }
 0x4e3   : > { %6945 = vmatprep.mubr.msk.bf16.mxu1 %vm226_vm1, %v8317_v46  ;;  %v5047_v46 = vld [vmem:[#allocation2 + $0x1a1] sm:$0xff] }
 0x4ea   : > { %6946 = vmatmul.mubr.msk.bf16.gmra.mrb[12].mxu1 %vm226_vm1, %v8330_v47  ;;  %v5063_v47 = vpack.c.bf16 %v5047_v46, %v5046_v33  ;;  %v8919_v46 = vld [vmem:[#allocation10_spill] sm:$0xff] }
 0x4eb   : > { %6949 = vmatprep.mubr.msk.bf16.mxu1 %vm226_vm1, %v8333_v38  ;;  %v5340_v38 = vld [vmem:[#allocation2 + $0x19a] sm:$0xff] }
 0x4f2   : > { %6950 = vmatmul.mubr.msk.bf16.gmra.mrb[16].mxu1 %vm226_vm1, %v8346_v52  ;;  %v5341_v52 = vld [vmem:[#allocation2 + $0x1a2] sm:$0xff] }
 0x4f3   : > { %6953 = vmatprep.mubr.msk.bf16.mxu1 %vm226_vm1, %v8349_v44  ;;  %v5357_v44 = vpack.c.bf16 %v5341_v52, %v5340_v38 }
 0x4fa   : > { %6954 = vmatmul.mubr.msk.bf16.gmra.mrb[20].mxu1 %vm226_vm1, %v8362_v24  ;;  %v8725_v24 = vld [vmem:[%s8869_s4] ss:$0 sm:$0xff] }
 0x4fb   : > { %6957 = vmatprep.mubr.msk.bf16.mxu1 %vm226_vm1, %v8364_v21 }
 0x502   : > { %6958 = vmatmul.mubr.msk.bf16.gmra.mrb[24].mxu1 %vm226_vm1, %v8370_v45 }
 0x503   : > { %6961 = vmatprep.mubr.msk.bf16.mxu1 %vm226_vm1, %v8585_v16 }
 0x50a   : > { %6962 = vmatmul.mubr.msk.bf16.gmra.mrb[28].mxu1 %vm226_vm1, %v5063_v47 }
 0x50b   : > { %6967 = vmatprep.mubr.msk.bf16.mxu1 %vm226_vm1, %v8449_v49 }
 0x512   : > { %6968 = vmatmul.mubr.msk.bf16.vlgmr.msra.gmra.mrb[0].mxu1 %vm226_vm1, %v8459_v34 }
 0x513   : > { %6971 = vmatprep.mubr.msk.bf16.mxu1 %vm226_vm1, %v8461_v26 }
 0x51a   : > { %6972 = vmatmul.mubr.msk.bf16.gmra.mrb[4].mxu1 %vm226_vm1, %v8467_v31 }
 0x51b   : > { %6975 = vmatprep.mubr.msk.bf16.mxu1 %vm226_vm1, %v8469_v40 }
 0x522   : > { %6976 = vmatmul.mubr.msk.bf16.gmra.mrb[8].mxu1 %vm226_vm1, %v8475_v28 }
 0x523   : > { %6979 = vmatprep.mubr.msk.bf16.mxu1 %vm226_vm1, %v8477_v56 }
 0x52a   : > { %6980 = vmatmul.mubr.msk.bf16.gmra.mrb[12].mxu1 %vm226_vm1, %v8483_v35 }
 0x52b   : > { %6983 = vmatprep.mubr.msk.bf16.mxu1 %vm226_vm1, %v8485_v22 }
 0x532   : > { %6984 = vmatmul.mubr.msk.bf16.gmra.mrb[16].mxu1 %vm226_vm1, %v8491_v10 }
 0x533   : > { %6987 = vmatprep.mubr.msk.bf16.mxu1 %vm226_vm1, %v8493_v2 }
 0x53a   : > { %6988 = vmatmul.mubr.msk.bf16.gmra.mrb[20].mxu1 %vm226_vm1, %v8499_v23 }
 0x53b   : > { %6991 = vmatprep.mubr.msk.bf16.mxu1 %vm226_vm1, %v8501_v19 }
 0x542   : > { %6992 = vmatmul.mubr.msk.bf16.gmra.mrb[24].mxu1 %vm226_vm1, %v8507_v61 }
 0x543   : > { %6995 = vmatprep.mubr.msk.bf16.mxu1 %vm226_vm1, %v8624_v63 }
 0x54a   : > { %6996 = vmatmul.mubr.msk.bf16.gmra.mrb[28].mxu1 %vm226_vm1, %v5357_v44  ;;  %v8920_v44 = vld [vmem:[#allocation8_spill] sm:$0xff] }
 0x5e5   : > { %v6969_v21 = vpop.f32.mrb[0].mxu1 }
 0x5e6   : > { %v5613_v45 = vadd.f32 %v6969_v21, %v8725_v24  ;;  %v5445_v49 = vpop.f32.mrb[1].mxu1 }
 0x5e7   : > { %v5611_v34 = vadd.f32 %v8725_v24, %v5445_v49  ;;  %v6970_v26 = vpop.f32.mrb[2].mxu1  ;;  %v8921_v49 = vld [vmem:[#allocation11_spill] sm:$0xff] }
 0x5e8   : > { %v5645_v31 = vadd.f32 %v5613_v45, %v7664_v6  ;;  %v5614_v40 = vadd.f32 %v6970_v26, %v8725_v24  ;;  %v5448_v28 = vpop.f32.mrb[3].mxu1  ;;  %v8922_v26 = vld [vmem:[#allocation9_spill] sm:$0xff] }
 0x5e9   : > { %v5643_v56 = vadd.f32 %v5611_v34, %v7658_v4  ;;  %v5612_v35 = vadd.f32 %v8725_v24, %v5448_v28 }
 0x5ea   : > { %5677 = vst.msk [vmem:[%s8733_s22 + $0x10] sm:$0xff] %vm226_vm1, %v5645_v31  ;;  %v5646_v22 = vadd.f32 %v5614_v40, %v7671_v9 }
 0x5eb   : > { %5675 = vst.msk [vmem:[%s8733_s22] sm:$0xff] %vm226_vm1, %v5643_v56  ;;  %v5644_v10 = vadd.f32 %v5612_v35, %v7661_v5 }
 0x5ec   : > { %5678 = vst.msk [vmem:[%s8733_s22 + $0x18] sm:$0xff] %vm226_vm1, %v5646_v22 }
 0x5ed   : > { %5676 = vst.msk [vmem:[%s8733_s22 + $0x8] sm:$0xff] %vm226_vm1, %v5644_v10  ;;  %v6973_v6 = vpop.f32.mrb[4].mxu1  ;;  %v8923_v10 = vld [vmem:[#allocation14_spill] sm:$0xff] }
 0x5ee   : > { %v5617_v4 = vadd.f32 %v6973_v6, %v8725_v24  ;;  %v5461_v2 = vpop.f32.mrb[5].mxu1 }
 0x5ef   : > { %v5615_v23 = vadd.f32 %v8725_v24, %v5461_v2  ;;  %v6974_v19 = vpop.f32.mrb[6].mxu1 }
 0x5f0   : > { %v5649_v9 = vadd.f32 %v5617_v4, %v7684_v13  ;;  %v5618_v61 = vadd.f32 %v6974_v19, %v8725_v24  ;;  %v5464_v51 = vpop.f32.mrb[7].mxu1 }
 0x5f1   : > { %v5647_v5 = vadd.f32 %v5615_v23, %v7678_v11  ;;  %v5616_v55 = vadd.f32 %v8725_v24, %v5464_v51  ;;  %v8924_v23 = vld [vmem:[#allocation12_spill] sm:$0xff] }
 0x5f2   : > { %5681 = vst.msk [vmem:[%s8733_s22 + $0x30] sm:$0xff] %vm226_vm1, %v5649_v9  ;;  %v5650_v7 = vadd.f32 %v5618_v61, %v7691_v14  ;;  %v8925_v61 = vld [vmem:[#allocation15_spill] sm:$0xff] }
 0x5f3   : > { %5679 = vst.msk [vmem:[%s8733_s22 + $0x20] sm:$0xff] %vm226_vm1, %v5647_v5  ;;  %v5648_v16 = vadd.f32 %v5616_v55, %v7681_v12  ;;  %v8926_v5 = vld [vmem:[#allocation13_spill] sm:$0xff] }
 0x5f4   : > { %5682 = vst.msk [vmem:[%s8733_s22 + $0x38] sm:$0xff] %vm226_vm1, %v5650_v7 }
 0x5f5   : > { %5680 = vst.msk [vmem:[%s8733_s22 + $0x28] sm:$0xff] %vm226_vm1, %v5648_v16  ;;  %v6977_v13 = vpop.f32.mrb[8].mxu1 }
 0x5f6   : > { %v5621_v11 = vadd.f32 %v6977_v13, %v8725_v24  ;;  %v5477_v36 = vpop.f32.mrb[9].mxu1 }
 0x5f7   : > { %v5619_v57 = vadd.f32 %v8725_v24, %v5477_v36  ;;  %v6978_v39 = vpop.f32.mrb[10].mxu1 }
 0x5f8   : > { %v5653_v14 = vadd.f32 %v5621_v11, %v7709_v17  ;;  %v5622_v42 = vadd.f32 %v6978_v39, %v8725_v24  ;;  %v5480_v63 = vpop.f32.mrb[11].mxu1 }
 0x5f9   : > { %v5651_v12 = vadd.f32 %v5619_v57, %v7696_v15  ;;  %v5620_v43 = vadd.f32 %v8725_v24, %v5480_v63  ;;  %v8927_v57 = vld [vmem:[#allocation18_spill] sm:$0xff]  ;;  %v8928_v63 = vld [vmem:[#allocation16_spill] sm:$0xff] }
 0x5fa   : > { %5685 = vst.msk [vmem:[%s8733_s22 + $0x50] sm:$0xff] %vm226_vm1, %v5653_v14  ;;  %v5654_v60 = vadd.f32 %v5622_v42, %v7712_v18 }
 0x5fb   : > { %5683 = vst.msk [vmem:[%s8733_s22 + $0x40] sm:$0xff] %vm226_vm1, %v5651_v12  ;;  %v5652_v1 = vadd.f32 %v5620_v43, %v8914_v30 }
 0x5fc   : > { %5686 = vst.msk [vmem:[%s8733_s22 + $0x58] sm:$0xff] %vm226_vm1, %v5654_v60  ;;  %v8929_v60 = vld [vmem:[#allocation19_spill] sm:$0xff] }
 0x5fd   : > { %5684 = vst.msk [vmem:[%s8733_s22 + $0x48] sm:$0xff] %vm226_vm1, %v5652_v1  ;;  %v6981_v17 = vpop.f32.mrb[12].mxu1  ;;  %v8930_v1 = vld [vmem:[#allocation17_spill] sm:$0xff] }
 0x5fe   : > { %v5625_v15 = vadd.f32 %v6981_v17, %v8725_v24  ;;  %v5493_v27 = vpop.f32.mrb[13].mxu1 }
 0x5ff   : > { %v5623_v53 = vadd.f32 %v8725_v24, %v5493_v27  ;;  %v6982_v37 = vpop.f32.mrb[14].mxu1 }
 0x600   : > { %v5657_v18 = vadd.f32 %v5625_v15, %v8915_v3  ;;  %v5626_v50 = vadd.f32 %v6982_v37, %v8725_v24  ;;  %v5496_v48 = vpop.f32.mrb[15].mxu1 }
 0x601   : > { %v5655_v25 = vadd.f32 %v5623_v53, %v8916_v20  ;;  %v5624_v58 = vadd.f32 %v8725_v24, %v5496_v48 }
 0x602   : > { %5689 = vst.msk [vmem:[%s8733_s22 + $0x70] sm:$0xff] %vm226_vm1, %v5657_v18  ;;  %v5658_v54 = vadd.f32 %v5626_v50, %v8917_v59  ;;  %v8931_v18 = vld [vmem:[#allocation22_spill] sm:$0xff] }
 0x603   : > { %5687 = vst.msk [vmem:[%s8733_s22 + $0x60] sm:$0xff] %vm226_vm1, %v5655_v25  ;;  %v5656_v0 = vadd.f32 %v5624_v58, %v8918_v29  ;;  %v8932_v25 = vld [vmem:[#allocation20_spill] sm:$0xff] }
 0x604   : > { %5690 = vst.msk [vmem:[%s8733_s22 + $0x78] sm:$0xff] %vm226_vm1, %v5658_v54  ;;  %v8933_v54 = vld [vmem:[#allocation23_spill] sm:$0xff] }
 0x605   : > { %5688 = vst.msk [vmem:[%s8733_s22 + $0x68] sm:$0xff] %vm226_vm1, %v5656_v0  ;;  %v6985_v41 = vpop.f32.mrb[16].mxu1  ;;  %v8934_v0 = vld [vmem:[#allocation21_spill] sm:$0xff] }
 0x606   : > { %v5629_v8 = vadd.f32 %v6985_v41, %v8725_v24  ;;  %v5509_v32 = vpop.f32.mrb[17].mxu1 }
 0x607   : > { %v5627_v62 = vadd.f32 %v8725_v24, %v5509_v32  ;;  %v6986_v33 = vpop.f32.mrb[18].mxu1 }
 0x608   : > { %v5661_v47 = vadd.f32 %v5629_v8, %v8919_v46  ;;  %v5630_v38 = vadd.f32 %v6986_v33, %v8725_v24  ;;  %v5512_v52 = vpop.f32.mrb[19].mxu1 }
 0x609   : > { %v5659_v21 = vadd.f32 %v5627_v62, %v8920_v44  ;;  %v5628_v45 = vadd.f32 %v8725_v24, %v5512_v52 }
 0x60a   : > { %5693 = vst.msk [vmem:[%s8733_s22 + $0x90] sm:$0xff] %vm226_vm1, %v5661_v47  ;;  %v5662_v34 = vadd.f32 %v5630_v38, %v8921_v49 }
 0x60b   : > { %5691 = vst.msk [vmem:[%s8733_s22 + $0x80] sm:$0xff] %vm226_vm1, %v5659_v21  ;;  %v5660_v31 = vadd.f32 %v5628_v45, %v8922_v26 }
 0x60c   : > { %5694 = vst.msk [vmem:[%s8733_s22 + $0x98] sm:$0xff] %vm226_vm1, %v5662_v34 }
 0x60d   : > { %5692 = vst.msk [vmem:[%s8733_s22 + $0x88] sm:$0xff] %vm226_vm1, %v5660_v31  ;;  %v6989_v40 = vpop.f32.mrb[20].mxu1 }
 0x60e   : > { %v5633_v28 = vadd.f32 %v6989_v40, %v8725_v24  ;;  %v5525_v56 = vpop.f32.mrb[21].mxu1 }
 0x60f   : > { %v5631_v35 = vadd.f32 %v8725_v24, %v5525_v56  ;;  %v6990_v22 = vpop.f32.mrb[22].mxu1 }
 0x610   : > { %v5665_v6 = vadd.f32 %v5633_v28, %v8923_v10  ;;  %v5634_v4 = vadd.f32 %v6990_v22, %v8725_v24  ;;  %v5528_v2 = vpop.f32.mrb[23].mxu1 }
 0x611   : > { %v5663_v19 = vadd.f32 %v5631_v35, %v8924_v23  ;;  %v5632_v9 = vadd.f32 %v8725_v24, %v5528_v2 }
 0x612   : > { %5697 = vst.msk [vmem:[%s8733_s22 + $0xb0] sm:$0xff] %vm226_vm1, %v5665_v6  ;;  %v5666_v51 = vadd.f32 %v5634_v4, %v8925_v61 }
 0x613   : > { %5695 = vst.msk [vmem:[%s8733_s22 + $0xa0] sm:$0xff] %vm226_vm1, %v5663_v19  ;;  %v5664_v55 = vadd.f32 %v5632_v9, %v8926_v5 }
 0x614   : > { %5698 = vst.msk [vmem:[%s8733_s22 + $0xb8] sm:$0xff] %vm226_vm1, %v5666_v51 }
 0x615   : > { %5696 = vst.msk [vmem:[%s8733_s22 + $0xa8] sm:$0xff] %vm226_vm1, %v5664_v55  ;;  %v6993_v7 = vpop.f32.mrb[24].mxu1 }
 0x616   : > { %v5637_v16 = vadd.f32 %v6993_v7, %v8725_v24  ;;  %v5541_v13 = vpop.f32.mrb[25].mxu1 }
 0x617   : > { %v5635_v11 = vadd.f32 %v8725_v24, %v5541_v13  ;;  %v6994_v36 = vpop.f32.mrb[26].mxu1 }
 0x618   : > { %v5669_v39 = vadd.f32 %v5637_v16, %v8927_v57  ;;  %v5638_v14 = vadd.f32 %v6994_v36, %v8725_v24  ;;  %v5544_v42 = vpop.f32.mrb[27].mxu1 }
 0x619   : > { %v5667_v12 = vadd.f32 %v5635_v11, %v8928_v63  ;;  %v5636_v43 = vadd.f32 %v8725_v24, %v5544_v42 }
 0x61a   : > { %5701 = vst.msk [vmem:[%s8733_s22 + $0xd0] sm:$0xff] %vm226_vm1, %v5669_v39  ;;  %v5670_v30 = vadd.f32 %v5638_v14, %v8929_v60 }
 0x61b   : > { %5699 = vst.msk [vmem:[%s8733_s22 + $0xc0] sm:$0xff] %vm226_vm1, %v5667_v12  ;;  %v5668_v17 = vadd.f32 %v5636_v43, %v8930_v1 }
 0x61c   : > { %5702 = vst.msk [vmem:[%s8733_s22 + $0xd8] sm:$0xff] %vm226_vm1, %v5670_v30 }
 0x61d   : > { %5700 = vst.msk [vmem:[%s8733_s22 + $0xc8] sm:$0xff] %vm226_vm1, %v5668_v17  ;;  %v6997_v15 = vpop.f32.mrb[28].mxu1 }
 0x61e   : > { %v5641_v27 = vadd.f32 %v6997_v15, %v8725_v24  ;;  %v5557_v53 = vpop.f32.mrb[29].mxu1 }
 0x61f   : > { %v5639_v37 = vadd.f32 %v8725_v24, %v5557_v53  ;;  %v6998_v3 = vpop.f32.mrb[30].mxu1 }
 0x620   : > { %v5673_v50 = vadd.f32 %v5641_v27, %v8931_v18  ;;  %v5642_v48 = vadd.f32 %v6998_v3, %v8725_v24  ;;  %v5560_v20 = vpop.f32.mrb[31].mxu1 }
 0x621   : > { %v5671_v58 = vadd.f32 %v5639_v37, %v8932_v25  ;;  %v5640_v59 = vadd.f32 %v8725_v24, %v5560_v20 }
 0x622   : > { %5705 = vst.msk [vmem:[%s8733_s22 + $0xf0] sm:$0xff] %vm226_vm1, %v5673_v50  ;;  %v5674_v29 = vadd.f32 %v5642_v48, %v8933_v54 }
 0x623   : > { %5703 = vst.msk [vmem:[%s8733_s22 + $0xe0] sm:$0xff] %vm226_vm1, %v5671_v58  ;;  %v5672_v41 = vadd.f32 %v5640_v59, %v8934_v0 }
 0x624   : > { %5706 = vst.msk [vmem:[%s8733_s22 + $0xf8] sm:$0xff] %vm226_vm1, %v5674_v29 }
 0x625   : > { %5704 = vst.msk [vmem:[%s8733_s22 + $0xe8] sm:$0xff] %vm226_vm1, %v5672_v41 }
 0x626 PF: > { %s15_s18 = sadd.s32 1, %s7544_s18  }
 0x627   : > { %p12_p4 = scmp.ge.s32.totalorder %s15_s18, 4  }
 0x629   :  { %14 = sbr.rel (!%p12_p4) target bundleno = 1 (0x1), region = 89 }

</bundles_post_ra>
